<compile_context>
chip_gen: v5e
topology: v5e:2x2
jax: 0.10.0
libtpu: 0.0.40
codegen_flags: <defaults>
</compile_context>

<pallas_src>
import jax
import jax.numpy as jnp
import numpy as np
from jax.experimental import pallas as pl
from jax.experimental.pallas import tpu as pltpu


# --------------------------------------------------------------------------
# Kernel (built per (n_branches, coefficient-pattern) via closure)
# --------------------------------------------------------------------------
def _make_kernel(n_br, has_coef):
    """Kernel ref order:
       x_0..x_{n_br-1}            (tile_n, L_i)   compute_dtype
       c_* (only branches w/ coef)(tile_n, C)     compute_dtype
       target                     (tile_n, 1)     f32
       w_0..w_{n_br-1}            (L_i, C)        compute_dtype (resident)
       b_0..b_{n_br-1}            (1, C)          f32           (resident)
       wg                         (C, F)          compute_dtype (resident)
       wt                         (1, F)          f32           (resident)
       bo                         (1, F)          f32           (resident)
       o_ref                      (tile_n, F)     out_dtype
    """
    n_cs = sum(has_coef)

    def kernel(*refs):
        x_refs = refs[0:n_br]
        c_refs = refs[n_br:n_br + n_cs]
        t_ref = refs[n_br + n_cs]
        w_refs = refs[n_br + n_cs + 1: 2 * n_br + n_cs + 1]
        b_refs = refs[2 * n_br + n_cs + 1: 3 * n_br + n_cs + 1]
        wg_ref, wt_ref, bo_ref, o_ref = refs[3 * n_br + n_cs + 1:]

        # Per-branch encoder (Linear) -> optional coefficient mask -> blend sum.
        # MXU has huge slack at these K sizes; f32 accumulation throughout.
        ci = 0
        acc = None
        for i in range(n_br):
            h = jnp.dot(x_refs[i][...], w_refs[i][...],
                        preferred_element_type=jnp.float32)
            h = h + b_refs[i][...]                         # f32 bias
            if has_coef[i]:
                h = h * c_refs[ci][...].astype(jnp.float32)
                ci += 1
            acc = h if acc is None else acc + h

        # Final Linear: blended part on the MXU, target column + bias as f32
        # broadcasts on the VPU, then ReLU.
        y = jnp.dot(acc.astype(wg_ref.dtype), wg_ref[...],
                    preferred_element_type=jnp.float32)
        y = y + t_ref[...] * wt_ref[...]                   # target feature col
        y = y + bo_ref[...]
        o_ref[...] = jnp.maximum(y, 0.0).astype(o_ref.dtype)

    return kernel


# --------------------------------------------------------------------------
# Wrapper
# --------------------------------------------------------------------------
def _round_up(x, m):
    return ((x + m - 1) // m) * m


def blending_encoder(xs, ws, bs, cs, target, w_out, b_out, *,
                     tile_n=1024,
                     compute_dtype=jnp.bfloat16,
                     out_dtype=jnp.float32):
    """Fused BlendingEncoder forward.

    xs     : list of branch inputs, xs[i] is (N, L_i)
    ws, bs : per-branch Linear encoder params, (L_i, C) and (C,)
    cs     : list of blending coefficients (len(cs) <= len(xs)), each (N, C)
    target : (N, 1) target-time column appended as the (C+1)-th feature
    w_out  : (C+1, F) final Linear weight (last row = target column)
    b_out  : (F,)     final Linear bias
    """
    n_br = len(xs)
    assert n_br >= 1 and len(ws) == n_br and len(bs) == n_br
    assert len(cs) <= n_br
    N = xs[0].shape[0]
    C = ws[0].shape[1]
    F = w_out.shape[1]
    assert w_out.shape[0] == C + 1
    Ls = [w.shape[0] for w in ws]
    has_coef = tuple(i < len(cs) for i in range(n_br))
    n_cs = len(cs)

    # ---- batch tiling -----------------------------------------------------
    # Multiple of 16 (bf16 sublane packing); cap so the parallel grid has at
    # least 2 steps (v7x has 2 TensorCores); clamp to the (padded) batch.
    tile_n = _round_up(max(16, tile_n), 16)
    tile_n = max(16, min(tile_n, _round_up(pl.cdiv(N, 2), 16)))
    n_tiles = pl.cdiv(N, tile_n)
    N_pad = n_tiles * tile_n

    def _rows(a, dtype):
        a = a.astype(dtype)
        if N_pad != N:
            a = jnp.pad(a, ((0, N_pad - N), (0, 0)))   # padded rows sliced off
        return a

    # Activations in compute_dtype (cast/pad fusible into the input DMA via
    # allow_input_fusion); target stays f32 for the epilogue.
    xs_in = [_rows(x, compute_dtype) for x in xs]
    cs_in = [_rows(c, compute_dtype) for c in cs]
    t_in = _rows(target, jnp.float32)

    # Resident weights: MXU operands in compute_dtype, biases/target row f32.
    ws_in = [w.astype(compute_dtype) for w in ws]
    bs_in = [b.reshape(1, C).astype(jnp.float32) for b in bs]
    wg = w_out[:C, :].astype(compute_dtype)        # (C, F)
    wt = w_out[C:, :].astype(jnp.float32)          # (1, F)  target column
    bo = b_out.reshape(1, F).astype(jnp.float32)   # (1, F)

    row_spec = lambda shape: pl.BlockSpec(shape, lambda i: (i, 0))
    res_spec = lambda shape: pl.BlockSpec(shape, lambda i: (0, 0))

    in_specs = (
        [row_spec((tile_n, L)) for L in Ls]
        + [row_spec((tile_n, C)) for _ in range(n_cs)]
        + [row_spec((tile_n, 1))]
        + [res_spec((L, C)) for L in Ls]
        + [res_spec((1, C)) for _ in range(n_br)]
        + [res_spec((C, F)), res_spec((1, F)), res_spec((1, F))]
    )
    n_inputs = len(in_specs)
    n_act = n_br + n_cs + 1   # per-tile activation operands (fusible casts)
    allow_fusion = [True] * n_act + [False] * (n_inputs - n_act)

    out = pl.pallas_call(
        _make_kernel(n_br, has_coef),
        out_shape=jax.ShapeDtypeStruct((N_pad, F), out_dtype),
        grid=(n_tiles,),
        in_specs=in_specs,
        out_specs=row_spec((tile_n, F)),
        compiler_params=pltpu.CompilerParams(
            dimension_semantics=("parallel",),
            vmem_limit_bytes=32 * 1024 * 1024,
            allow_input_fusion=allow_fusion,
        ),
    )(*xs_in, *cs_in, t_in, *ws_in, *bs_in, wg, wt, bo)

    return out[:N, :]


# --------------------------------------------------------------------------
# Pure-JAX reference (mirrors the PyTorch module's forward)
# --------------------------------------------------------------------------
def reference(xs, ws, bs, cs, target, w_out, b_out):
    encs = []
    for i, (x, w, b) in enumerate(zip(xs, ws, bs)):
        e = x @ w + b
        if i < len(cs):
            e = e * cs[i]
        encs.append(e)
    g = encs[0]
    for e in encs[1:]:
        g = g + e
    x = jnp.concatenate([g, target], axis=-1)
    return jnp.maximum(x @ w_out + b_out, 0.0)


# --------------------------------------------------------------------------
if __name__ == "__main__":
    # Two Linear-style branch encoders, C features each (in_features = C + 1),
    # final Linear -> F features.  N is NOT a multiple of the tile so the
    # ragged-batch path is exercised; F is a multiple of 128 so output stores
    # are lane-dense.
    N, L1, L2, C, F = 500, 24, 16, 16, 128

    key = jax.random.PRNGKey(0)
    ks = jax.random.split(key, 10)

    x1 = jax.random.normal(ks[0], (N, L1), jnp.float32)
    x2 = jax.random.normal(ks[1], (N, L2), jnp.float32)

    w1 = jax.random.normal(ks[2], (L1, C), jnp.float32) * 0.1
    b1 = jax.random.normal(ks[3], (C,), jnp.float32) * 0.1
    w2 = jax.random.normal(ks[4], (L2, C), jnp.float32) * 0.1
    b2 = jax.random.normal(ks[5], (C,), jnp.float32) * 0.1

    c1 = jax.random.uniform(ks[6], (N, C), jnp.float32)
    c2 = jax.random.uniform(ks[9], (N, C), jnp.float32)

    target = jnp.full((N, 1), 0.1, jnp.float32)

    w_out = jax.random.normal(ks[7], (C + 1, F), jnp.float32) * 0.1
    b_out = jax.random.normal(ks[8], (F,), jnp.float32) * 0.1

    xs, ws, bs = [x1, x2], [w1, w2], [b1, b2]
    fwd = jax.jit(blending_encoder,
                  static_argnames=("tile_n", "compute_dtype", "out_dtype"))

    # 1) exact f32 compute path, both coefficients present.
    cs = [c1, c2]
    ref = reference(xs, ws, bs, cs, target, w_out, b_out)
    out = jax.block_until_ready(
        fwd(xs, ws, bs, cs, target, w_out, b_out, compute_dtype=jnp.float32))
    np.testing.assert_allclose(np.asarray(out), np.asarray(ref),
                               rtol=1e-4, atol=1e-4)

    # 2) default bf16 MXU-operand path (f32 accumulate / epilogue).
    out = jax.block_until_ready(fwd(xs, ws, bs, cs, target, w_out, b_out))
    np.testing.assert_allclose(np.asarray(out), np.asarray(ref),
                               rtol=5e-2, atol=3e-2)

    # 3) bf16 output path (halves output writeback bytes).
    out = jax.block_until_ready(
        fwd(xs, ws, bs, cs, target, w_out, b_out, out_dtype=jnp.bfloat16))
    np.testing.assert_allclose(np.asarray(out, dtype=np.float32),
                               np.asarray(ref), rtol=7e-2, atol=5e-2)

    # 4) missing-coefficient branch: module skips the multiply for branch 1;
    #    no identity ones-array is materialized or DMA'd.
    cs1 = [c1]
    ref1 = reference(xs, ws, bs, cs1, target, w_out, b_out)
    out1 = jax.block_until_ready(
        fwd(xs, ws, bs, cs1, target, w_out, b_out, compute_dtype=jnp.float32))
    np.testing.assert_allclose(np.asarray(out1), np.asarray(ref1),
                               rtol=1e-4, atol=1e-4)

    print("KERNEL_OK")
</pallas_src>

<mosaic_0001>
module attributes {stable_mosaic.version = 11 : i64} {
  func.func @kernel(%arg0: i32, %arg1: memref<256x24xf32, #tpu.memory_space<vmem>>, %arg2: memref<256x16xf32, #tpu.memory_space<vmem>>, %arg3: memref<256x16xf32, #tpu.memory_space<vmem>>, %arg4: memref<256x16xf32, #tpu.memory_space<vmem>>, %arg5: memref<256x1xf32, #tpu.memory_space<vmem>>, %arg6: memref<24x16xf32, #tpu.memory_space<vmem>>, %arg7: memref<16x16xf32, #tpu.memory_space<vmem>>, %arg8: memref<1x16xf32, #tpu.memory_space<vmem>>, %arg9: memref<1x16xf32, #tpu.memory_space<vmem>>, %arg10: memref<16x128xf32, #tpu.memory_space<vmem>>, %arg11: memref<1x128xf32, #tpu.memory_space<vmem>>, %arg12: memref<1x128xf32, #tpu.memory_space<vmem>>, %arg13: memref<256x128xf32, #tpu.memory_space<vmem>>) attributes {dimension_semantics = [#tpu.dimension_semantics<parallel>], iteration_bounds = array<i64: 2>, scalar_prefetch = 0 : i64, scratch_operands = 0 : i64, tpu.core_type = #tpu.core_type<tc>, window_params = [{transform_indices = @transform_0, window_bounds = array<i64: 256, 24>}, {transform_indices = @transform_1, window_bounds = array<i64: 256, 16>}, {transform_indices = @transform_2, window_bounds = array<i64: 256, 16>}, {transform_indices = @transform_3, window_bounds = array<i64: 256, 16>}, {transform_indices = @transform_4, window_bounds = array<i64: 256, 1>}, {pipeline_mode = #tpu.pipeline_mode<synchronous>, transform_indices = @transform_5, window_bounds = array<i64: 24, 16>}, {pipeline_mode = #tpu.pipeline_mode<synchronous>, transform_indices = @transform_6, window_bounds = array<i64: 16, 16>}, {pipeline_mode = #tpu.pipeline_mode<synchronous>, transform_indices = @transform_7, window_bounds = array<i64: 1, 16>}, {pipeline_mode = #tpu.pipeline_mode<synchronous>, transform_indices = @transform_8, window_bounds = array<i64: 1, 16>}, {pipeline_mode = #tpu.pipeline_mode<synchronous>, transform_indices = @transform_9, window_bounds = array<i64: 16, 128>}, {pipeline_mode = #tpu.pipeline_mode<synchronous>, transform_indices = @transform_10, window_bounds = array<i64: 1, 128>}, {pipeline_mode = #tpu.pipeline_mode<synchronous>, transform_indices = @transform_11, window_bounds = array<i64: 1, 128>}, {transform_indices = @transform_12, window_bounds = array<i64: 256, 128>}]} {
    %c0 = arith.constant 0 : index
    %c0_0 = arith.constant 0 : index
    %0 = vector.load %arg1[%c0, %c0_0] : memref<256x24xf32, #tpu.memory_space<vmem>>, vector<256x24xf32>
    %c0_1 = arith.constant 0 : index
    %c0_2 = arith.constant 0 : index
    %1 = vector.load %arg6[%c0_1, %c0_2] : memref<24x16xf32, #tpu.memory_space<vmem>>, vector<24x16xf32>
    %cst = arith.constant dense<0.000000e+00> : vector<256x16xf32>
    %2 = tpu.matmul %0, %1, %cst {dimension_numbers = #tpu.dot_dimension_numbers<[1], [0], [0], [1], [0, 0, 1, 1], [], []>} : vector<256x24xf32>, vector<24x16xf32>, vector<256x16xf32> -> vector<256x16xf32>
    %c0_3 = arith.constant 0 : index
    %c0_4 = arith.constant 0 : index
    %3 = vector.load %arg8[%c0_3, %c0_4] : memref<1x16xf32, #tpu.memory_space<vmem>>, vector<1x16xf32>
    %4 = vector.broadcast %3 : vector<1x16xf32> to vector<256x16xf32>
    %5 = arith.addf %2, %4 : vector<256x16xf32>
    %c0_5 = arith.constant 0 : index
    %c0_6 = arith.constant 0 : index
    %6 = vector.load %arg3[%c0_5, %c0_6] : memref<256x16xf32, #tpu.memory_space<vmem>>, vector<256x16xf32>
    %7 = arith.mulf %5, %6 : vector<256x16xf32>
    %c0_7 = arith.constant 0 : index
    %c0_8 = arith.constant 0 : index
    %8 = vector.load %arg2[%c0_7, %c0_8] : memref<256x16xf32, #tpu.memory_space<vmem>>, vector<256x16xf32>
    %c0_9 = arith.constant 0 : index
    %c0_10 = arith.constant 0 : index
    %9 = vector.load %arg7[%c0_9, %c0_10] : memref<16x16xf32, #tpu.memory_space<vmem>>, vector<16x16xf32>
    %cst_11 = arith.constant dense<0.000000e+00> : vector<256x16xf32>
    %10 = tpu.matmul %8, %9, %cst_11 {dimension_numbers = #tpu.dot_dimension_numbers<[1], [0], [0], [1], [0, 0, 1, 1], [], []>} : vector<256x16xf32>, vector<16x16xf32>, vector<256x16xf32> -> vector<256x16xf32>
    %c0_12 = arith.constant 0 : index
    %c0_13 = arith.constant 0 : index
    %11 = vector.load %arg9[%c0_12, %c0_13] : memref<1x16xf32, #tpu.memory_space<vmem>>, vector<1x16xf32>
    %12 = vector.broadcast %11 : vector<1x16xf32> to vector<256x16xf32>
    %13 = arith.addf %10, %12 : vector<256x16xf32>
    %c0_14 = arith.constant 0 : index
    %c0_15 = arith.constant 0 : index
    %14 = vector.load %arg4[%c0_14, %c0_15] : memref<256x16xf32, #tpu.memory_space<vmem>>, vector<256x16xf32>
    %15 = arith.mulf %13, %14 : vector<256x16xf32>
    %16 = arith.addf %7, %15 : vector<256x16xf32>
    %c0_16 = arith.constant 0 : index
    %c0_17 = arith.constant 0 : index
    %17 = vector.load %arg10[%c0_16, %c0_17] : memref<16x128xf32, #tpu.memory_space<vmem>>, vector<16x128xf32>
    %cst_18 = arith.constant dense<0.000000e+00> : vector<256x128xf32>
    %18 = tpu.matmul %16, %17, %cst_18 {dimension_numbers = #tpu.dot_dimension_numbers<[1], [0], [0], [1], [0, 0, 1, 1], [], []>} : vector<256x16xf32>, vector<16x128xf32>, vector<256x128xf32> -> vector<256x128xf32>
    %c0_19 = arith.constant 0 : index
    %c0_20 = arith.constant 0 : index
    %19 = vector.load %arg5[%c0_19, %c0_20] : memref<256x1xf32, #tpu.memory_space<vmem>>, vector<256x1xf32>
    %c0_21 = arith.constant 0 : index
    %c0_22 = arith.constant 0 : index
    %20 = vector.load %arg11[%c0_21, %c0_22] : memref<1x128xf32, #tpu.memory_space<vmem>>, vector<1x128xf32>
    %21 = vector.broadcast %19 : vector<256x1xf32> to vector<256x128xf32>
    %22 = vector.broadcast %20 : vector<1x128xf32> to vector<256x128xf32>
    %23 = arith.mulf %21, %22 : vector<256x128xf32>
    %24 = arith.addf %18, %23 : vector<256x128xf32>
    %c0_23 = arith.constant 0 : index
    %c0_24 = arith.constant 0 : index
    %25 = vector.load %arg12[%c0_23, %c0_24] : memref<1x128xf32, #tpu.memory_space<vmem>>, vector<1x128xf32>
    %26 = vector.broadcast %25 : vector<1x128xf32> to vector<256x128xf32>
    %27 = arith.addf %24, %26 : vector<256x128xf32>
    %cst_25 = arith.constant 0.000000e+00 : f32
    %28 = vector.broadcast %cst_25 : f32 to vector<256x128xf32>
    %29 = arith.maximumf %27, %28 : vector<256x128xf32>
    %c0_26 = arith.constant 0 : index
    %c0_27 = arith.constant 0 : index
    %30 = vector.load %arg13[%c0_26, %c0_27] : memref<256x128xf32, #tpu.memory_space<vmem>>, vector<256x128xf32>
    tpu.vector_store %arg13[%c0_26, %c0_27], %29 {strides = array<i32>} : memref<256x128xf32, #tpu.memory_space<vmem>>, vector<256x128xf32>,
    return
  }
  func.func @transform_0(%arg0: i32) -> (i32, i32) {
    %c0_i32 = arith.constant 0 : i32
    %c0_i32_0 = arith.constant 0 : i32
    return %arg0, %c0_i32 : i32, i32
  }
  func.func @transform_1(%arg0: i32) -> (i32, i32) {
    %c0_i32 = arith.constant 0 : i32
    %c0_i32_0 = arith.constant 0 : i32
    return %arg0, %c0_i32 : i32, i32
  }
  func.func @transform_2(%arg0: i32) -> (i32, i32) {
    %c0_i32 = arith.constant 0 : i32
    %c0_i32_0 = arith.constant 0 : i32
    return %arg0, %c0_i32 : i32, i32
  }
  func.func @transform_3(%arg0: i32) -> (i32, i32) {
    %c0_i32 = arith.constant 0 : i32
    %c0_i32_0 = arith.constant 0 : i32
    return %arg0, %c0_i32 : i32, i32
  }
  func.func @transform_4(%arg0: i32) -> (i32, i32) {
    %c0_i32 = arith.constant 0 : i32
    %c0_i32_0 = arith.constant 0 : i32
    return %arg0, %c0_i32 : i32, i32
  }
  func.func @transform_5(%arg0: i32) -> (i32, i32) {
    %c0_i32 = arith.constant 0 : i32
    %c0_i32_0 = arith.constant 0 : i32
    %c0_i32_1 = arith.constant 0 : i32
    return %c0_i32, %c0_i32_0 : i32, i32
  }
  func.func @transform_6(%arg0: i32) -> (i32, i32) {
    %c0_i32 = arith.constant 0 : i32
    %c0_i32_0 = arith.constant 0 : i32
    %c0_i32_1 = arith.constant 0 : i32
    return %c0_i32, %c0_i32_0 : i32, i32
  }
  func.func @transform_7(%arg0: i32) -> (i32, i32) {
    %c0_i32 = arith.constant 0 : i32
    %c0_i32_0 = arith.constant 0 : i32
    %c0_i32_1 = arith.constant 0 : i32
    return %c0_i32, %c0_i32_0 : i32, i32
  }
  func.func @transform_8(%arg0: i32) -> (i32, i32) {
    %c0_i32 = arith.constant 0 : i32
    %c0_i32_0 = arith.constant 0 : i32
    %c0_i32_1 = arith.constant 0 : i32
    return %c0_i32, %c0_i32_0 : i32, i32
  }
  func.func @transform_9(%arg0: i32) -> (i32, i32) {
    %c0_i32 = arith.constant 0 : i32
    %c0_i32_0 = arith.constant 0 : i32
    %c0_i32_1 = arith.constant 0 : i32
    return %c0_i32, %c0_i32_0 : i32, i32
  }
  func.func @transform_10(%arg0: i32) -> (i32, i32) {
    %c0_i32 = arith.constant 0 : i32
    %c0_i32_0 = arith.constant 0 : i32
    %c0_i32_1 = arith.constant 0 : i32
    return %c0_i32, %c0_i32_0 : i32, i32
  }
  func.func @transform_11(%arg0: i32) -> (i32, i32) {
    %c0_i32 = arith.constant 0 : i32
    %c0_i32_0 = arith.constant 0 : i32
    %c0_i32_1 = arith.constant 0 : i32
    return %c0_i32, %c0_i32_0 : i32, i32
  }
  func.func @transform_12(%arg0: i32) -> (i32, i32) {
    %c0_i32 = arith.constant 0 : i32
    %c0_i32_0 = arith.constant 0 : i32
    return %arg0, %c0_i32 : i32, i32
  }
}

</mosaic_0001>

<bundles_post_ra>
// kernel: blending_encoder.2
= control target key start
LH: loop header
LB: loop body
LE: loop exit
PB: predicated region body
PF: predicated region fallthrough
CT: control target
= control target key end

     0   :  { %s6040_s27 = smov 0   ;;  %s7846_s0 = inlined_call_operand.vmem [shape: f32[24,16], index: 0, kind: input, shape index: {}]   ;;  %s7847_s1 = inlined_call_operand.vmem [shape: f32[16,16], index: 1, kind: input, shape index: {}]   ;;  %s7848_s2 = inlined_call_operand.vmem [shape: f32[1,16], index: 2, kind: input, shape index: {}]   ;;  %s7849_s3 = inlined_call_operand.vmem [shape: f32[1,16], index: 3, kind: input, shape index: {}]   ;;  %s7850_s4 = inlined_call_operand.vmem [shape: f32[16,128], index: 4, kind: input, shape index: {}]   ;;  %s7851_s5 = inlined_call_operand.vmem [shape: f32[1,128], index: 5, kind: input, shape index: {}]   ;;  %s7852_s6 = inlined_call_operand.vmem [shape: f32[1,128], index: 6, kind: input, shape index: {}]   ;;  %s7853_s7 = inlined_call_operand.vmem [shape: f32[500,1], index: 7, kind: input, shape index: {}]   ;;  %s7854_s8 = inlined_call_operand.<no memory space> [shape: f32[], index: 8, kind: input, shape index: {}]   ;;  %s7855_s9 = inlined_call_operand.vmem [shape: f32[500,16], index: 9, kind: input, shape index: {}]   ;;  %s7856_s10 = inlined_call_operand.vmem [shape: f32[500,16], index: 10, kind: input, shape index: {}]   ;;  %s7857_s11 = inlined_call_operand.vmem [shape: f32[500,16], index: 11, kind: input, shape index: {}]   ;;  %s7858_s12 = inlined_call_operand.vmem [shape: f32[500,24], index: 12, kind: input, shape index: {}]   ;;  %s7859_s13 = inlined_call_operand.vmem [shape: f32[512,128], index: 13, kind: output, shape index: {}]  }
   0x1   :  { %v6038_v0 = vstv %s7854_s8 }
   0x2 LB: > { %s5026_s28 = sadd.s32 4294967295, %s5962_s27   ;;  %p5030_p0 = scmp.ge.s32.totalorder %s5962_s27, 1  ;;  %s5962_s27 = sphi %s6040_s27, %s28_s27  }
   0x3   : > { %p453_p1 = scmp.lt.s32.totalorder %s5962_s27, 3 }
   0x5   : > { %p454_p2 = pnand %p5030_p0, %p453_p1 }
   0x6   : > { %s6057_s17 = sshll.u32 (!%p454_p2), %s5026_s28, 5  ;;  %s6059_s18 = sshll.u32 (!%p454_p2), %s5026_s28, 8 }
   0x7   : > { %457 = sbr.rel (%p454_p2) target bundleno = 485 (0x1e5), region = 68  ;;  %p540_p3 = scmp.lt.s32.totalorder (!%p454_p2), %s6057_s17, 62 }
   0x8   : > { %s5509_s23 = sadd.s32 (!%p454_p2), 192, %s6059_s18  ;;  %s5463_s24 = sadd.s32 (!%p454_p2), 8, %s6059_s18 }
   0x9   : > { %s5511_s25 = sadd.s32 (!%p454_p2), 200, %s6059_s18  ;;  %s5465_s19 = sadd.s32 (!%p454_p2), 16, %s6059_s18 }
   0xa   : > { %s5513_s20 = sadd.s32 (!%p454_p2), 208, %s6059_s18  ;;  %s5467_s21 = sadd.s32 (!%p454_p2), 24, %s6059_s18 }
   0xb   : > { %s5515_s22 = sadd.s32 (!%p454_p2), 216, %s6059_s18  ;;  %s1179_s29 = sadd.s32 (!%p454_p2), 30, %s6057_s17 }
   0xc   : > { %v3760_v1 = vld [vmem:[%s7846_s0 + $0x10] sm:$0xff]  ;;  %v3759_v2 = vld [vmem:[%s7846_s0 + $0x8] sm:$0xff]  ;;  %v613_v4 = vlaneseq  ;;  %v3758_v5 = vld [vmem:[%s7846_s0] sm:$0xff]  ;;  %v615_v7 = vstv %s6059_s18  ;;  %s541_s26 = scalar_select %p540_p3, %s6057_s17, 62  ;;  %vm3765_vm0 = vcmask 195584   ;;  %vm4077_vm5 = vcmask 130048  }
   0xd   : > { %v4072_v3 = vld [vmem:[%s7847_s1 + $0x8] sm:$0xff]  ;;  %3875 = vmatpush.msra.mxu0 %v3760_v1  ;;  %5931 = vmatpush.msra.mxu3 %v3760_v1  ;;  %v4071_v6 = vld [vmem:[%s7847_s1] sm:$0xff]  ;;  %v1070_v10 = vstv %s5509_s23  ;;  %v633_v11 = vstv %s5463_s24  ;;  %s5469_s23 = sadd.s32 32, %s6059_s18  ;;  %s5517_s24 = sadd.s32 224, %s6059_s18 }
   0xe   : > { %4188 = vmatpush.msra.mxu1 %v4072_v3  ;;  %v6070_v8 = vshrl.u32 %v613_v4, 7  ;;  %v6072_v9 = vand.u32 127, %v613_v4  ;;  %v1089_v12 = vstv %s5511_s25  ;;  %s6083_s28 = sshll.u32 %s541_s26, 3  ;;  %v652_v29 = vstv %s5465_s19  ;;  %s5471_s25 = sadd.s32 40, %s6059_s18 }
   0xf   : > { %3876 = vmatpush.msra.mxu0 %v3759_v2  ;;  %5932 = vmatpush.msra.mxu3 %v3759_v2  ;;  %s6095_s8 = scalar_lea.vmem %s7858_s12, %s6083_s28  ;;  %s6105_s16 = scalar_lea.vmem %s7857_s11, %s6083_s28  ;;  %v1108_v30 = vstv %s5513_s20  ;;  %v671_v42 = vstv %s5467_s21  ;;  %v1127_v43 = vstv %s5515_s22  ;;  %v690_v55 = vstv %s5469_s23 }
  0x10   : > { %4189 = vmatpush.msra.mxu1 %v4071_v6  ;;  %v6078_v13 = vadd.s32 %v615_v7, %v6070_v8  ;;  %v6081_v14 = vadd.s32 %v1070_v10, %v6070_v8  ;;  %v6086_v15 = vadd.s32 %v633_v11, %v6070_v8  ;;  %v6089_v16 = vadd.s32 %v1089_v12, %v6070_v8  ;;  %v611_v17 = vld [vmem:[%s6095_s8] sm:$0xff]  ;;  %v5049_v26 = vld [vmem:[%s6095_s8 + $0x8] sm:$0xff]  ;;  %v5051_v39 = vld [vmem:[%s6095_s8 + $0x10] sm:$0xff]  ;;  %s5519_s26 = sadd.s32 232, %s6059_s18  ;;  %s6241_s30 = ssub.s32 62, %s1179_s29 }
  0x11   : > { %3877 = vmatpush.msra.mxu0 %v3758_v5  ;;  %5933 = vmatpush.msra.mxu3 %v3758_v5  ;;  %vm622_vm2 = vcmp.lt.s32.totalorder %v6072_v9, 24  ;;  %vm1245_vm3 = vcmp.lt.s32.totalorder %v6072_v9, 16  ;;  %v5095_v18 = vld [vmem:[%s6095_s8 + $0xc0] sm:$0xff]  ;;  %v5097_v27 = vld [vmem:[%s6095_s8 + $0xc8] sm:$0xff]  ;;  %v6148_v34 = vadd.s32 %v652_v29, %v6070_v8  ;;  %v6151_v35 = vadd.s32 %v1108_v30, %v6070_v8  ;;  %v5099_v40 = vld [vmem:[%s6095_s8 + $0xd0] sm:$0xff]  ;;  %p1181_p4 = scmp.lt.s32.totalorder %s6241_s30, 0 }
  0x12   : > { %vm617_vm1 = vcmp.lt.s32.totalorder %v6078_v13, 500  ;;  %vm7860_vm4 = vcmp.lt.s32.totalorder %v6081_v14, 500  ;;  %v1234_v19 = vld [vmem:[%s6105_s16] sm:$0xff]  ;;  %vm635_vm6 = vcmp.lt.s32.totalorder %v6086_v15, 500  ;;  %vm7867_vm7 = vcmp.lt.s32.totalorder %v6089_v16, 500  ;;  %v5112_v28 = vld [vmem:[%s6105_s16 + $0x8] sm:$0xff] }
  0x13   : > { %5934 = vmatpush.msrb.mxu3 %v4072_v3  ;;  %v618_v20 = vsel %vm617_vm1, %v611_v17, %v6038_v0  ;;  %v1073_v21 = vsel %vm7860_vm4, %v5095_v18, %v6038_v0  ;;  %v1241_v22 = vsel %vm617_vm1, %v1234_v19, %v6038_v0  ;;  %v636_v31 = vsel %vm635_vm6, %v5049_v26, %v6038_v0  ;;  %v5114_v41 = vld [vmem:[%s6105_s16 + $0x10] sm:$0xff]  ;;  %v5053_v52 = vld [vmem:[%s6095_s8 + $0x18] sm:$0xff]  ;;  %v5055_v2 = vld [vmem:[%s6095_s8 + $0x20] sm:$0xff]  ;;  %s5473_s14 = sadd.s32 48, %s6059_s18  ;;  %s5521_s15 = sadd.s32 240, %s6059_s18 }
  0x14   : > { %v623_v23 = vsel %vm622_vm2, %v618_v20, %v6038_v0  ;;  %v1078_v24 = vsel %vm622_vm2, %v1073_v21, %v6038_v0  ;;  %v1246_v25 = vsel %vm1245_vm3, %v1241_v22, %v6038_v0  ;;  %v1092_v32 = vsel %vm7867_vm7, %v5097_v27, %v6038_v0  ;;  %v5101_v53 = vld [vmem:[%s6095_s8 + $0xd8] sm:$0xff]  ;;  %v5103_v3 = vld [vmem:[%s6095_s8 + $0xe0] sm:$0xff]  ;;  %s1207_s19 = sadd.s32 31, %s6057_s17  ;;  %v5057_v21 = vld [vmem:[%s6095_s8 + $0x28] sm:$0xff]  ;;  %s5475_s22 = sadd.s32 56, %s6059_s18 }
  0x15   : > { %5935 = vmatpush.msrb.mxu3 %v4071_v6  ;;  %5363 = vmatmul.msk.f32.vlgmr.msra.gmra.mxu0 %vm3765_vm0, %v623_v23  ;;  %v1259_v33 = vsel %vm635_vm6, %v5112_v28, %v6038_v0  ;;  %v641_v36 = vsel %vm622_vm2, %v636_v31, %v6038_v0  ;;  %v1097_v37 = vsel %vm622_vm2, %v1092_v32, %v6038_v0  ;;  %vm7865_vm8 = vcmp.lt.s32.totalorder %v6148_v34, 500  ;;  %v5116_v54 = vld [vmem:[%s6105_s16 + $0x18] sm:$0xff]  ;;  %v5118_v4 = vld [vmem:[%s6105_s16 + $0x20] sm:$0xff]  ;;  %v5105_v22 = vld [vmem:[%s6095_s8 + $0xe8] sm:$0xff]  ;;  %s6280_s20 = scalar_select %p1181_p4, 0, 255 }
  0x16   : > { %5387 = vmatmul.msk.f32.vlgmr.msra.gmra.mxu3 %vm3765_vm0, %v1078_v24  ;;  %5395 = vmatmul.msk.f32.vlgmr.msra.gmra.mxu1 %vm4077_vm5, %v1246_v25  ;;  %v1264_v38 = vsel %vm1245_vm3, %v1259_v33, %v6038_v0  ;;  %vm7868_vm9 = vcmp.lt.s32.totalorder %v6151_v35, 500  ;;  %v655_v44 = vsel %vm7865_vm8, %v5051_v39, %v6038_v0  ;;  %v1278_v46 = vsel %vm7865_vm8, %v5114_v41, %v6038_v0  ;;  %v5120_v23 = vld [vmem:[%s6105_s16 + $0x28] sm:$0xff]  ;;  %s6284_s21 = ssub.s32 62, %s1207_s19  ;;  %s5523_s23 = sadd.s32 248, %s6059_s18  ;;  %v5059_v39 = vld [vmem:[%s6095_s8 + $0x30] sm:$0xff] }
  0x17   : > { %v1111_v45 = vsel %vm7868_vm9, %v5099_v40, %v6038_v0  ;;  %v6182_v47 = vadd.s32 %v671_v42, %v6070_v8  ;;  %v6185_v48 = vadd.s32 %v1127_v43, %v6070_v8  ;;  %v660_v49 = vsel %vm622_vm2, %v655_v44, %v6038_v0  ;;  %v5107_v32 = vld [vmem:[%s6095_s8 + $0xf0] sm:%s6280_s20]  ;;  %p1209_p5 = scmp.lt.s32.totalorder %s6284_s21, 0  ;;  %s5481_s29 = sadd.s32 80, %s6059_s18 }
  0x18   : > { %v1116_v50 = vsel %vm622_vm2, %v1111_v45, %v6038_v0  ;;  %v1283_v51 = vsel %vm1245_vm3, %v1278_v46, %v6038_v0  ;;  %v1146_v56 = vstv %s5517_s24  ;;  %v6216_v60 = vadd.s32 %v690_v55, %v6070_v8  ;;  %v5122_v41 = vld [vmem:[%s6105_s16 + $0x30] sm:$0xff]  ;;  %s5489_s19 = sadd.s32 112, %s6059_s18  ;;  %p606_p6 = scmp.lt.s32.totalorder %s6057_s17, 63 }
  0x19   : > { %vm7863_vm10 = vcmp.lt.s32.totalorder %v6182_v47, 500  ;;  %vm7869_vm11 = vcmp.lt.s32.totalorder %v6185_v48, 500  ;;  %v6219_v61 = vadd.s32 %v1146_v56, %v6070_v8  ;;  %v709_v5 = vstv %s5471_s25  ;;  %s6330_s24 = scalar_select %p1209_p5, 0, 255 }
  0x1a   : > { %v674_v57 = vsel %vm7863_vm10, %v5053_v52, %v6038_v0  ;;  %v1130_v58 = vsel %vm7869_vm11, %v5101_v53, %v6038_v0  ;;  %v1297_v59 = vsel %vm7863_vm10, %v5116_v54, %v6038_v0  ;;  %vm7862_vm12 = vcmp.lt.s32.totalorder %v6216_v60, 500  ;;  %s5477_s25 = sadd.s32 64, %s6059_s18  ;;  %s7958_s17 = smov (!%p606_p6, %s6057_s17), 63 }
  0x1b   : > { %v679_v62 = vsel %vm622_vm2, %v674_v57, %v6038_v0  ;;  %v1135_v63 = vsel %vm622_vm2, %v1130_v58, %v6038_v0  ;;  %v1302_v1 = vsel %vm1245_vm3, %v1297_v59, %v6038_v0  ;;  %vm7870_vm13 = vcmp.lt.s32.totalorder %v6219_v61, 500  ;;  %v5109_v52 = vld [vmem:[%s6095_s8 + $0xf8] sm:%s6330_s24] }
  0x1c   : > { %v1165_v6 = vstv %s5519_s26  ;;  %v693_v7 = vsel %vm7862_vm12, %v5055_v2, %v6038_v0  ;;  %v1149_v10 = vsel %vm7870_vm13, %v5103_v3, %v6038_v0  ;;  %v1316_v11 = vsel %vm7862_vm12, %v5118_v4, %v6038_v0  ;;  %v5061_v57 = vld [vmem:[%s6095_s8 + $0x38] sm:$0xff]  ;;  %s5479_s26 = sadd.s32 72, %s6059_s18 }
  0x1d   : > { %5364 = vmatmul.msk.f32.gmra.mxu0 %vm3765_vm0, %v641_v36  ;;  %v6253_v12 = vadd.s32 %v709_v5, %v6070_v8  ;;  %v6256_v17 = vadd.s32 %v1165_v6, %v6070_v8  ;;  %v698_v18 = vsel %vm622_vm2, %v693_v7, %v6038_v0  ;;  %v1154_v19 = vsel %vm622_vm2, %v1149_v10, %v6038_v0  ;;  %v5124_v59 = vld [vmem:[%s6105_s16 + $0x38] sm:$0xff]  ;;  %v5063_v7 = vld [vmem:[%s6095_s8 + $0x40] sm:$0xff]  ;;  %v5160_v10 = vld [vmem:[%s6105_s16 + $0xc8] sm:$0xff] }
  0x1e   : > { %5388 = vmatmul.msk.f32.gmra.mxu3 %vm3765_vm0, %v1097_v37  ;;  %5396 = vmatmul.msk.f32.gmra.mxu1 %vm4077_vm5, %v1264_v38  ;;  %v1321_v20 = vsel %vm1245_vm3, %v1316_v11, %v6038_v0  ;;  %v728_v24 = vstv %s5473_s14  ;;  %v1193_v25 = vstv %s5521_s15  ;;  %v1186_v26 = vstv %s6241_s30  ;;  %v5126_v11 = vld [vmem:[%s6105_s16 + $0x40] sm:$0xff]  ;;  %s5483_s30 = sadd.s32 88, %s6059_s18  ;;  %s5485_s14 = sadd.s32 96, %s6059_s18 }
  0x1f   : > { %vm7861_vm14 = vcmp.lt.s32.totalorder %v6253_v12, 500  ;;  %vm7871_vm15 = vcmp.lt.s32.totalorder %v6256_v17, 500  ;;  %v6296_v30 = vadd.s32 %v728_v24, %v6070_v8  ;;  %v6299_v31 = vadd.s32 %v1193_v25, %v6070_v8  ;;  %s5487_s15 = sadd.s32 104, %s6059_s18 }
  0x20   : > { %v712_v27 = vsel %vm7861_vm14, %v5057_v21, %v6038_v0  ;;  %v1168_v28 = vsel %vm7871_vm15, %v5105_v22, %v6038_v0  ;;  %v1335_v29 = vsel %vm7861_vm14, %v5120_v23, %v6038_v0  ;;  %vm6303_vm4 = vcmp.lt.s32.totalorder %v1186_v26, 0  ;;  %v5065_v26 = vld [vmem:[%s6095_s8 + $0x48] sm:$0xff] }
  0x21   : > { %v717_v36 = vsel %vm622_vm2, %v712_v27, %v6038_v0  ;;  %v1173_v37 = vsel %vm622_vm2, %v1168_v28, %v6038_v0  ;;  %v1340_v38 = vsel %vm1245_vm3, %v1335_v29, %v6038_v0  ;;  %vm7864_vm14 = vcmp.lt.s32.totalorder %v6296_v30, 500  ;;  %v5162_v27 = vld [vmem:[%s6105_s16 + $0xd0] sm:$0xff]  ;;  %v5128_v28 = vld [vmem:[%s6105_s16 + $0x48] sm:$0xff] }
  0x22   : > { %v1188_v40 = vsel %vm6303_vm4, %v6038_v0, %v5107_v32  ;;  %vm7872_vm12 = vcmp.lt.s32.totalorder %v6299_v31, 500  ;;  %v747_v42 = vstv %s5475_s22  ;;  %v1221_v43 = vstv %s5523_s23  ;;  %s6647_s22 = scalar_lea.vmem %s7856_s10, %s6083_s28  ;;  %s5499_s23 = sadd.s32 152, %s6059_s18 }
  0x23   : > { %v1214_v44 = vstv %s6284_s21  ;;  %v731_v45 = vsel %vm7864_vm14, %v5059_v39, %v6038_v0  ;;  %v1196_v46 = vsel %vm7872_vm12, %v1188_v40, %v6038_v0  ;;  %v804_v29 = vstv %s5481_s29  ;;  %s5493_s29 = sadd.s32 128, %s6059_s18  ;;  %s5497_s21 = sadd.s32 144, %s6059_s18 }
  0x24   : > { %vm6351_vm10 = vcmp.lt.s32.totalorder %v1214_v44, 0  ;;  %v736_v54 = vsel %vm622_vm2, %v731_v45, %v6038_v0  ;;  %v1201_v55 = vsel %vm622_vm2, %v1196_v46, %v6038_v0  ;;  %v5130_v44 = vld [vmem:[%s6105_s16 + $0x50] sm:$0xff]  ;;  %v823_v45 = vstv %s5483_s30  ;;  %s5507_s30 = sadd.s32 184, %s6059_s18 }
  0x25   : > { %5365 = vmatmul.msk.f32.gmra.mxu0 %vm3765_vm0, %v660_v49  ;;  %v1354_v49 = vsel %vm7864_vm14, %v5122_v41, %v6038_v0  ;;  %v1216_v58 = vsel %vm6351_vm10, %v6038_v0, %v5109_v52 }
  0x26   : > { %5389 = vmatmul.msk.f32.gmra.mxu3 %vm3765_vm0, %v1116_v50  ;;  %5397 = vmatmul.msk.f32.gmra.mxu1 %vm4077_vm5, %v1283_v51  ;;  %v6344_v50 = vadd.s32 %v747_v42, %v6070_v8  ;;  %v6347_v51 = vadd.s32 %v1221_v43, %v6070_v8  ;;  %v1359_v56 = vsel %vm1245_vm3, %v1354_v49, %v6038_v0  ;;  %v5067_v42 = vld [vmem:[%s6095_s8 + $0x50] sm:$0xff]  ;;  %v5164_v43 = vld [vmem:[%s6105_s16 + $0xd8] sm:$0xff] }
  0x27   : > { %v1753_v49 = vsel %vm7869_vm11, %v5164_v43, %v6038_v0 }
  0x28   : > { %vm7866_vm14 = vcmp.lt.s32.totalorder %v6344_v50, 500  ;;  %vm7873_vm8 = vcmp.lt.s32.totalorder %v6347_v51, 500 }
  0x29   : > { %v1373_v2 = vsel %vm7866_vm14, %v5124_v59, %v6038_v0  ;;  %v5166_v59 = vld [vmem:[%s6105_s16 + $0xe0] sm:$0xff] }
  0x2a   : > { %v1378_v6 = vsel %vm1245_vm3, %v1373_v2, %v6038_v0  ;;  %v1772_v2 = vsel %vm7870_vm13, %v5166_v59, %v6038_v0 }
  0x2d   : > { %5366 = vmatmul.msk.f32.gmra.mxu0 %vm3765_vm0, %v679_v62  ;;  %v766_v62 = vstv %s5477_s25  ;;  %s5501_s25 = sadd.s32 160, %s6059_s18 }
  0x2e   : > { %5390 = vmatmul.msk.f32.gmra.mxu3 %vm3765_vm0, %v1135_v63  ;;  %5398 = vmatmul.msk.f32.gmra.mxu1 %vm4077_vm5, %v1302_v1  ;;  %v750_v63 = vsel %vm7866_vm14, %v5061_v57, %v6038_v0  ;;  %v1224_v1 = vsel %vm7873_vm8, %v1216_v58, %v6038_v0  ;;  %v6385_v3 = vadd.s32 %v766_v62, %v6070_v8  ;;  %v5069_v58 = vld [vmem:[%s6095_s8 + $0x58] sm:$0xff] }
  0x2f   : > { %v755_v4 = vsel %vm622_vm2, %v750_v63, %v6038_v0  ;;  %v1229_v5 = vsel %vm622_vm2, %v1224_v1, %v6038_v0  ;;  %v5132_v62 = vld [vmem:[%s6105_s16 + $0x58] sm:$0xff]  ;;  %v842_v63 = vstv %s5485_s14 }
  0x30   : > { %vm7878_vm14 = vcmp.lt.s32.totalorder %v6385_v3, 500 }
  0x31   : > { %v1392_v21 = vsel %vm7878_vm14, %v5126_v11, %v6038_v0  ;;  %v5071_v11 = vld [vmem:[%s6095_s8 + $0x60] sm:$0xff] }
  0x32   : > { %v1397_v25 = vsel %vm1245_vm3, %v1392_v21, %v6038_v0 }
  0x35   : > { %5367 = vmatmul.msk.f32.gmra.mxu0 %vm3765_vm0, %v698_v18  ;;  %v785_v18 = vstv %s5479_s26  ;;  %s5491_s26 = sadd.s32 120, %s6059_s18 }
  0x36   : > { %5391 = vmatmul.msk.f32.gmra.mxu3 %vm3765_vm0, %v1154_v19  ;;  %5399 = vmatmul.msk.f32.gmra.mxu1 %vm4077_vm5, %v1321_v20  ;;  %v769_v19 = vsel %vm7878_vm14, %v5063_v7, %v6038_v0  ;;  %v1715_v20 = vsel %vm7867_vm7, %v5160_v10, %v6038_v0  ;;  %v6414_v22 = vadd.s32 %v785_v18, %v6070_v8  ;;  %v5168_v18 = vld [vmem:[%s6105_s16 + $0xe8] sm:$0xff]  ;;  %v899_v59 = vstv %s5491_s26  ;;  %s6656_s26 = scalar_lea.vmem %s7855_s9, %s6083_s28 }
  0x37   : > { %v774_v23 = vsel %vm622_vm2, %v769_v19, %v6038_v0  ;;  %v1720_v24 = vsel %vm1245_vm3, %v1715_v20, %v6038_v0  ;;  %v1777_v7 = vsel %vm1245_vm3, %v1772_v2, %v6038_v0  ;;  %v5134_v19 = vld [vmem:[%s6105_s16 + $0x60] sm:$0xff]  ;;  %v861_v20 = vstv %s5487_s15  ;;  %s6618_s15 = scalar_lea.vmem %s7853_s7, %s6083_s28  ;;  %s5505_s28 = sadd.s32 176, %s6059_s18 }
  0x38   : > { %vm787_vm7 = vcmp.lt.s32.totalorder %v6414_v22, 500  ;;  %v6602_v2 = vadd.s32 %v899_v59, %v6070_v8  ;;  %vm7890_vm14 = vcmp.lt.s32.totalorder %v6182_v47, 500 }
  0x39   : > { %v788_v32 = vsel %vm787_vm7, %v5065_v26, %v6038_v0  ;;  %v5170_v26 = vld [vmem:[%s6105_s16 + $0xf0] sm:%s6280_s20] }
  0x3a   : > { %v793_v39 = vsel %vm622_vm2, %v788_v32, %v6038_v0  ;;  %v5073_v32 = vld [vmem:[%s6095_s8 + $0x68] sm:$0xff] }
  0x3d   : > { %5368 = vmatmul.msk.f32.gmra.mxu0 %vm3765_vm0, %v717_v36  ;;  %v1734_v36 = vsel %vm7868_vm9, %v5162_v27, %v6038_v0 }
  0x3e   : > { %5392 = vmatmul.msk.f32.gmra.mxu3 %vm3765_vm0, %v1173_v37  ;;  %5400 = vmatmul.msk.f32.gmra.mxu1 %vm4077_vm5, %v1340_v38  ;;  %v1411_v37 = vsel %vm787_vm7, %v5128_v28, %v6038_v0  ;;  %v6443_v38 = vadd.s32 %v804_v29, %v6070_v8  ;;  %v1739_v40 = vsel %vm1245_vm3, %v1734_v36, %v6038_v0 }
  0x3f   : > { %v1416_v41 = vsel %vm1245_vm3, %v1411_v37, %v6038_v0  ;;  %v1811_v36 = vsel %vm6303_vm4, %v6038_v0, %v5170_v26  ;;  %v5136_v37 = vld [vmem:[%s6105_s16 + $0x68] sm:$0xff] }
  0x40   : > { %vm806_vm9 = vcmp.lt.s32.totalorder %v6443_v38, 500 }
  0x41   : > { %v807_v46 = vsel %vm806_vm9, %v5067_v42, %v6038_v0  ;;  %v1430_v52 = vsel %vm806_vm9, %v5130_v44, %v6038_v0  ;;  %v1819_v42 = vsel %vm7872_vm12, %v1811_v36, %v6038_v0  ;;  %v5079_v36 = vld [vmem:[%s6095_s8 + $0x80] sm:$0xff] }
  0x42   : > { %v1435_v57 = vsel %vm1245_vm3, %v1430_v52, %v6038_v0  ;;  %v1824_v52 = vsel %vm1245_vm3, %v1819_v42, %v6038_v0 }
  0x45   : > { %5369 = vmatmul.msk.f32.gmra.mxu0 %vm3765_vm0, %v736_v54  ;;  %v6472_v54 = vadd.s32 %v823_v45, %v6070_v8  ;;  %v4383_v45 = vld [vmem:[%s7850_s4] sm:$0xff] }
  0x46   : > { %5393 = vmatmul.msk.f32.gmra.mxu3 %vm3765_vm0, %v1201_v55  ;;  %5401 = vmatmul.msk.f32.gmra.mxu1 %vm4077_vm5, %v1359_v56  ;;  %v812_v55 = vsel %vm622_vm2, %v807_v46, %v6038_v0  ;;  %v1758_v56 = vsel %vm1245_vm3, %v1753_v49, %v6038_v0  ;;  %v5172_v46 = vld [vmem:[%s6105_s16 + $0xf8] sm:%s6330_s24] }
  0x47   : > { %vm7875_vm11 = vcmp.lt.s32.totalorder %v6472_v54, 500 }
  0x48   : > { %v826_v1 = vsel %vm7875_vm11, %v5069_v58, %v6038_v0  ;;  %v5138_v58 = vld [vmem:[%s6105_s16 + $0x70] sm:$0xff] }
  0x4d   : > { %5370 = vmatmul.msk.f32.gmra.mxu0 %vm3765_vm0, %v755_v4  ;;  %v1449_v4 = vsel %vm7875_vm11, %v5132_v62, %v6038_v0 }
  0x4e   : > { %5394 = vmatmul.msk.f32.gmra.mxu3 %vm3765_vm0, %v1229_v5  ;;  %5402 = vmatmul.msk.f32.gmra.mxu1 %vm4077_vm5, %v1378_v6  ;;  %v6501_v5 = vadd.s32 %v842_v63, %v6070_v8  ;;  %v831_v6 = vsel %vm622_vm2, %v826_v1, %v6038_v0  ;;  %v1454_v10 = vsel %vm1245_vm3, %v1449_v4, %v6038_v0 }
  0x50   : > { %vm844_vm13 = vcmp.lt.s32.totalorder %v6501_v5, 500 }
  0x51   : > { %v845_v21 = vsel %vm844_vm13, %v5071_v11, %v6038_v0  ;;  %v5140_v11 = vld [vmem:[%s6105_s16 + $0x78] sm:$0xff] }
  0x52   : > { %v850_v27 = vsel %vm622_vm2, %v845_v21, %v6038_v0  ;;  %v5964_v21 = vmov 0  }
  0x53   : > { %5947 = vset.pattern.permute.xlu0 %v5964_v21  ;;  %5948 = vset.pattern.permute.xlu1 %v5964_v21 }
  0x54   : > { %5949 = vset.pattern.permute.xlu2 %v5964_v21 }
  0x55   : > { %5371 = vmatmul.msk.f32.gmra.mxu0 %vm3765_vm0, %v774_v23  ;;  %v1791_v23 = vsel %vm7871_vm15, %v5168_v18, %v6038_v0  ;;  %v918_v18 = vstv %s5493_s29  ;;  %s5495_s29 = sadd.s32 136, %s6059_s18 }
  0x56   : > { %5420 = vmatmul.msk.f32.vlgmr.msrb.gmra.mxu3 %vm4077_vm5, %v1720_v24  ;;  %5403 = vmatmul.msk.f32.gmra.mxu1 %vm4077_vm5, %v1397_v25  ;;  %v1468_v24 = vsel %vm844_vm13, %v5134_v19, %v6038_v0  ;;  %v6530_v25 = vadd.s32 %v861_v20, %v6070_v8  ;;  %v1796_v28 = vsel %vm1245_vm3, %v1791_v23, %v6038_v0  ;;  %v3103_v19 = vld [vmem:[%s6618_s15] sm:$0xff] }
  0x57   : > { %v1473_v29 = vsel %vm1245_vm3, %v1468_v24, %v6038_v0  ;;  %v3110_v23 = vsel %vm617_vm1, %v3103_v19, %v6038_v0  ;;  %v6638_v26 = vadd.s32 %v918_v18, %v6070_v8  ;;  %v5144_v19 = vld [vmem:[%s6105_s16 + $0x88] sm:$0xff] }
  0x58   : > { %vm7882_vm15 = vcmp.lt.s32.totalorder %v6530_v25, 500 }
  0x59   : > { %v1487_v43 = vsel %vm7882_vm15, %v5136_v37, %v6038_v0  ;;  %vm920_vm11 = vcmp.lt.s32.totalorder %v6638_v26, 500  ;;  %v2480_v37 = vld [vmem:[%s6656_s26] sm:$0xff] }
  0x5d   : > { %5372 = vmatmul.msk.f32.gmra.mxu0 %vm3765_vm0, %v793_v39  ;;  %v880_v39 = vstv %s5489_s19 }
  0x5e   : > { %5421 = vmatmul.msk.f32.gmra.mxu3 %vm4077_vm5, %v1739_v40  ;;  %5404 = vmatmul.msk.f32.gmra.mxu1 %vm4077_vm5, %v1416_v41  ;;  %v4384_v40 = vld [vmem:[%s7850_s4 + $0x8] sm:$0xff]  ;;  %v864_v41 = vsel %vm7882_vm15, %v5073_v32, %v6038_v0  ;;  %v6566_v44 = vadd.s32 %v880_v39, %v6070_v8  ;;  %v1857_v32 = vld [vmem:[%s6647_s22] sm:$0xff] }
  0x5f   : > { %4723 = vmatpush.msra.mxu2 %v4384_v40  ;;  %5936 = vmatpush.msra.mxu3 %v4384_v40  ;;  %v869_v49 = vsel %vm622_vm2, %v864_v41, %v6038_v0  ;;  %v5142_v39 = vld [vmem:[%s6105_s16 + $0x80] sm:$0xff]  ;;  %v937_v40 = vstv %s5495_s29  ;;  %v5301_v41 = vld [vmem:[%s6618_s15 + $0x8] sm:$0xff]  ;;  %v1864_v42 = vsel %vm617_vm1, %v1857_v32, %v6038_v0  ;;  %s5503_s29 = sadd.s32 168, %s6059_s18 }
  0x60   : > { %vm7874_vm12 = vcmp.lt.s32.totalorder %v6566_v44, 500 }
  0x61   : > { %4724 = vmatpush.msra.mxu2 %v4383_v45  ;;  %5937 = vmatpush.msra.mxu3 %v4383_v45  ;;  %v1506_v1 = vsel %vm7874_vm12, %v5138_v58, %v6038_v0  ;;  %v921_v45 = vsel %vm920_vm11, %v5079_v36, %v6038_v0 }
  0x62   : > { %v926_v59 = vsel %vm622_vm2, %v921_v45, %v6038_v0 }
  0x65   : > { %5373 = vmatmul.msk.f32.gmra.mxu0 %vm3765_vm0, %v812_v55  ;;  %v1492_v55 = vsel %vm1245_vm3, %v1487_v43, %v6038_v0  ;;  %v6676_v43 = vld [vmem:[%s7848_s2] ss:$0 sm:$0xff] }
  0x66   : > { %5422 = vmatmul.msk.f32.gmra.mxu3 %vm4077_vm5, %v1758_v56  ;;  %5405 = vmatmul.msk.f32.gmra.mxu1 %vm4077_vm5, %v1435_v57  ;;  %v5075_v56 = vld [vmem:[%s6095_s8 + $0x70] sm:$0xff]  ;;  %v1839_v57 = vsel %vm6351_vm10, %v6038_v0, %v5172_v46  ;;  %v3128_v46 = vsel %vm635_vm6, %v5301_v41, %v6038_v0 }
  0x67   : > { %v883_v62 = vsel %vm7874_vm12, %v5075_v56, %v6038_v0  ;;  %v1847_v63 = vsel %vm7873_vm8, %v1839_v57, %v6038_v0  ;;  %vm7876_vm8 = vcmp.lt.s32.totalorder %v6602_v2, 500  ;;  %vm3114_vm12 = vcmp.lt.s32.totalorder %v6072_v9, 1 }
  0x68   : > { %v888_v4 = vsel %vm622_vm2, %v883_v62, %v6038_v0  ;;  %v1525_v24 = vsel %vm7876_vm8, %v5140_v11, %v6038_v0  ;;  %v6696_v56 = vadd.s32 %v937_v40, %v6070_v8  ;;  %v3133_v13 = vsel %vm3114_vm12, %v3128_v46, %v6038_v0  ;;  %v5081_v11 = vld [vmem:[%s6095_s8 + $0x88] sm:$0xff] }
  0x69   : > { %v1869_v57 = vsel %vm1245_vm3, %v1864_v42, %v6038_v0 }
  0x6d   : > { %5374 = vmatmul.msk.f32.gmra.mxu0 %vm3765_vm0, %v831_v6  ;;  %v1852_v6 = vsel %vm1245_vm3, %v1847_v63, %v6038_v0 }
  0x6e   : > { %5423 = vmatmul.msk.f32.gmra.mxu3 %vm4077_vm5, %v1777_v7  ;;  %5406 = vmatmul.msk.f32.gmra.mxu1 %vm4077_vm5, %v1454_v10  ;;  %v1511_v7 = vsel %vm1245_vm3, %v1506_v1, %v6038_v0  ;;  %v5077_v10 = vld [vmem:[%s6095_s8 + $0x78] sm:$0xff] }
  0x6f   : > { %v902_v20 = vsel %vm7876_vm8, %v5077_v10, %v6038_v0  ;;  %v5238_v10 = vld [vmem:[%s6656_s26 + $0x8] sm:$0xff]  ;;  %vm7888_vm8 = vcmp.lt.s32.totalorder %v6148_v34, 500 }
  0x75   : > { %5375 = vmatmul.msk.f32.gmra.mxu0 %vm3765_vm0, %v850_v27  ;;  %v3115_v27 = vsel %vm3114_vm12, %v3110_v23, %v6038_v0  ;;  %v5303_v23 = vld [vmem:[%s6618_s15 + $0x10] sm:$0xff] }
  0x76   : > { %5424 = vmatmul.msk.f32.gmra.mxu3 %vm4077_vm5, %v1796_v28  ;;  %5407 = vmatmul.msk.f32.gmra.mxu1 %vm4077_vm5, %v1473_v29  ;;  %v907_v28 = vsel %vm622_vm2, %v902_v20, %v6038_v0  ;;  %v1530_v29 = vsel %vm1245_vm3, %v1525_v24, %v6038_v0  ;;  %v956_v20 = vstv %s5497_s21  ;;  %s5047_s21 = sshll.u32 %s7958_s17, 3 }
  0x77   : > { %4420 = vperm.xlu0 %5947, %v3115_v27   ;;  %v2505_v27 = vsel %vm635_vm6, %v5238_v10, %v6038_v0  ;;  %v6742_v15 = vadd.s32 %v956_v20, %v6070_v8 }
  0x78   : > { %v2510_v46 = vsel %vm1245_vm3, %v2505_v27, %v6038_v0 }
  0x7d   : > { %5376 = vmatmul.msk.f32.gmra.mxu0 %vm3765_vm0, %v869_v49  ;;  %v2487_v49 = vsel %vm617_vm1, %v2480_v37, %v6038_v0  ;;  %vm7877_vm1 = vcmp.lt.s32.totalorder %v6696_v56, 500 }
  0x7e   : > { %5425 = vmatmul.msk.f32.gmra.mxu3 %vm4077_vm5, %v1824_v52  ;;  %5408 = vmatmul.msk.f32.gmra.mxu1 %vm4077_vm5, %v1492_v55  ;;  %v6690_v52 = vld [vmem:[%s7849_s3] ss:$0 sm:$0xff]  ;;  %v1544_v55 = vsel %vm920_vm11, %v5142_v39, %v6038_v0  ;;  %v2492_v63 = vsel %vm1245_vm3, %v2487_v49, %v6038_v0  ;;  %v1563_v37 = vsel %vm7877_vm1, %v5144_v19, %v6038_v0 }
  0x7f   : > { %4425 = vperm.xlu0 %5947, %v3133_v13  }
  0x85   : > { %5377 = vmatmul.msk.f32.gmra.mxu0 %vm3765_vm0, %v888_v4  ;;  %v1549_v4 = vsel %vm1245_vm3, %v1544_v55, %v6038_v0  ;;  %v1568_v55 = vsel %vm1245_vm3, %v1563_v37, %v6038_v0 }
  0x86   : > { %5426 = vmatmul.msk.f32.gmra.mxu3 %vm4077_vm5, %v1852_v6  ;;  %5409 = vmatmul.msk.f32.gmra.mxu1 %vm4077_vm5, %v1511_v7  ;;  %v5175_v7 = vld [vmem:[%s6647_s22 + $0x8] sm:$0xff] }
  0x87   : > { %v1882_v24 = vsel %vm635_vm6, %v5175_v7, %v6038_v0  ;;  %vm7879_vm6 = vcmp.lt.s32.totalorder %v6742_v15, 500 }
  0x88   : > { %v1887_v40 = vsel %vm1245_vm3, %v1882_v24, %v6038_v0 }
  0x8d   : > { %5378 = vmatmul.msk.f32.gmra.mxu0 %vm3765_vm0, %v907_v28  ;;  %v940_v28 = vsel %vm7877_vm1, %v5081_v11, %v6038_v0  ;;  %vm7889_vm1 = vmmov %vm7888_vm8 }
  0x8e   : > { %5410 = vmatmul.msk.f32.gmra.mxu1 %vm4077_vm5, %v1530_v29  ;;  %v3147_v29 = vsel %vm7888_vm8, %v5303_v23, %v6038_v0  ;;  %v945_v42 = vsel %vm622_vm2, %v940_v28, %v6038_v0 }
  0x8f   : > { %v3152_v39 = vsel %vm3114_vm12, %v3147_v29, %v6038_v0 }
  0x90   : > { %4430 = vperm.xlu1 %5948, %v3152_v39  }
  0x92   : > { %v3879_v58 = vpop.f32.mrf.mxu0 }
  0x93   : > { %v3880_v62 = vadd.f32 %v6676_v43, %v3879_v58  ;;  %v4191_v1 = vpop.f32.mrf.mxu1  ;;  %v5240_v58 = vld [vmem:[%s6656_s26 + $0x10] sm:$0xff] }
  0x94   : > { %v4192_v6 = vadd.f32 %v6690_v52, %v4191_v1  ;;  %v975_v1 = vstv %s5499_s23  ;;  %v2524_v10 = vsel %vm7889_vm1, %v5240_v58, %v6038_v0  ;;  %vm7891_vm1 = vcmp.lt.s32.totalorder %v6182_v47, 500 }
  0x95   : > { %v4007_v18 = vmul.f32 %v3880_v62, %v1869_v57  ;;  %5379 = vmatmul.msk.f32.gmra.mxu0 %vm3765_vm0, %v926_v59  ;;  %v5177_v57 = vld [vmem:[%s6647_s22 + $0x10] sm:$0xff]  ;;  %v6789_v34 = vadd.s32 %v975_v1, %v6070_v8 }
  0x96   : > { %v4319_v21 = vmul.f32 %v4192_v6, %v2492_v63  ;;  %5411 = vmatmul.msk.f32.gmra.mxu1 %vm4077_vm5, %v1549_v4  ;;  %v5083_v59 = vld [vmem:[%s6095_s8 + $0x90] sm:$0xff]  ;;  %v5305_v6 = vld [vmem:[%s6618_s15 + $0x18] sm:$0xff]  ;;  %v1901_v7 = vsel %vm7888_vm8, %v5177_v57, %v6038_v0  ;;  %vm7892_vm8 = vmmov %vm7891_vm1 }
  0x97   : > { %v5146_v63 = vld [vmem:[%s6105_s16 + $0x90] sm:$0xff]  ;;  %v959_v11 = vsel %vm7879_vm6, %v5083_v59, %v6038_v0  ;;  %v1906_v24 = vsel %vm1245_vm3, %v1901_v7, %v6038_v0 }
  0x98   : > { %v4351_v36 = vadd.f32 %v4319_v21, %v4007_v18  ;;  %v3166_v18 = vsel %vm7890_vm14, %v5305_v6, %v6038_v0  ;;  %v1582_v21 = vsel %vm7879_vm6, %v5146_v63, %v6038_v0  ;;  %v964_v28 = vsel %vm622_vm2, %v959_v11, %v6038_v0 }
  0x99   : > { %v6736_v32 = vpop.f32.mrf.mxu3  ;;  %v3171_v23 = vsel %vm3114_vm12, %v3166_v18, %v6038_v0  ;;  %v1587_v39 = vsel %vm1245_vm3, %v1582_v21, %v6038_v0  ;;  %vm7880_vm14 = vcmp.lt.s32.totalorder %v6789_v34, 500 }
  0x9a   : > { %5427 = vmatmul.msk.f32.vlgmr.msra.gmra.mxu2 %vm4077_vm5, %v4351_v36  ;;  %v3882_v41 = vpop.f32.mrf.mxu0  ;;  %4435 = vperm.xlu1 %5948, %v3171_v23   ;;  %v2529_v36 = vsel %vm1245_vm3, %v2524_v10, %v6038_v0  ;;  %v5181_v23 = vld [vmem:[%s6647_s22 + $0x20] sm:$0xff] }
  0x9b   : > { %v3883_v45 = vadd.f32 %v6676_v43, %v3882_v41  ;;  %v4194_v49 = vpop.f32.mrf.mxu1  ;;  %v5179_v41 = vld [vmem:[%s6647_s22 + $0x18] sm:$0xff] }
  0x9c   : > { %v4195_v13 = vadd.f32 %v6690_v52, %v4194_v49  ;;  %v5148_v49 = vld [vmem:[%s6105_s16 + $0x98] sm:$0xff]  ;;  %v1920_v57 = vsel %vm7891_vm1, %v5179_v41, %v6038_v0 }
  0x9d   : > { %v4008_v62 = vmul.f32 %v3883_v45, %v1887_v40  ;;  %5380 = vmatmul.msk.f32.gmra.mxu0 %vm3765_vm0, %v945_v42  ;;  %v5085_v42 = vld [vmem:[%s6095_s8 + $0x98] sm:$0xff]  ;;  %v1601_v1 = vsel %vm7880_vm14, %v5148_v49, %v6038_v0  ;;  %v1925_v6 = vsel %vm1245_vm3, %v1920_v57, %v6038_v0 }
  0x9e   : > { %v4320_v4 = vmul.f32 %v4195_v13, %v2510_v46  ;;  %5412 = vmatmul.msk.f32.gmra.mxu1 %vm4077_vm5, %v1568_v55  ;;  %v5242_v46 = vld [vmem:[%s6656_s26 + $0x18] sm:$0xff]  ;;  %v994_v55 = vstv %s5501_s25  ;;  %v978_v58 = vsel %vm7880_vm14, %v5085_v42, %v6038_v0  ;;  %vm7895_vm14 = vcmp.lt.s32.totalorder %v6344_v50, 500 }
  0x9f   : > { %v2543_v63 = vsel %vm7892_vm8, %v5242_v46, %v6038_v0  ;;  %v983_v47 = vsel %vm622_vm2, %v978_v58, %v6038_v0  ;;  %vm7893_vm8 = vcmp.lt.s32.totalorder %v6216_v60, 500 }
  0xa0   : > { %v4352_v20 = vadd.f32 %v4320_v4, %v4008_v62  ;;  %v6832_v4 = vadd.s32 %v994_v55, %v6070_v8  ;;  %v2548_v11 = vsel %vm1245_vm3, %v2543_v63, %v6038_v0  ;;  %vm7894_vm6 = vmmov %vm7893_vm8 }
  0xa1   : > { %v6783_v19 = vpop.f32.mrf.mxu3 }
  0xa2   : > { %5428 = vmatmul.msk.f32.gmra.mxu2 %vm4077_vm5, %v4352_v20  ;;  %v3885_v27 = vpop.f32.mrf.mxu0  ;;  %v1606_v20 = vsel %vm1245_vm3, %v1601_v1, %v6038_v0  ;;  %vm7881_vm1 = vcmp.lt.s32.totalorder %v6832_v4, 500 }
  0xa3   : > { %v3886_v29 = vadd.f32 %v6676_v43, %v3885_v27  ;;  %v4197_v37 = vpop.f32.mrf.mxu1  ;;  %v5087_v27 = vld [vmem:[%s6095_s8 + $0xa0] sm:$0xff] }
  0xa4   : > { %v4198_v40 = vadd.f32 %v6690_v52, %v4197_v37  ;;  %v997_v42 = vsel %vm7881_vm1, %v5087_v27, %v6038_v0 }
  0xa5   : > { %v4009_v45 = vmul.f32 %v3886_v29, %v1906_v24  ;;  %5381 = vmatmul.msk.f32.gmra.mxu0 %vm3765_vm0, %v964_v28  ;;  %v5244_v24 = vld [vmem:[%s6656_s26 + $0x20] sm:$0xff]  ;;  %v1002_v63 = vsel %vm622_vm2, %v997_v42, %v6038_v0 }
  0xa6   : > { %v4321_v13 = vmul.f32 %v4198_v40, %v2529_v36  ;;  %5413 = vmatmul.msk.f32.gmra.mxu1 %vm4077_vm5, %v1587_v39  ;;  %v5150_v29 = vld [vmem:[%s6105_s16 + $0xa0] sm:$0xff]  ;;  %v1013_v36 = vstv %s5503_s29  ;;  %v5313_v39 = vld [vmem:[%s6618_s15 + $0x38] sm:$0xff]  ;;  %v1939_v40 = vsel %vm7893_vm8, %v5181_v23, %v6038_v0  ;;  %v2562_v41 = vsel %vm7894_vm6, %v5244_v24, %v6038_v0  ;;  %v5152_v24 = vld [vmem:[%s6105_s16 + $0xa8] sm:$0xff]  ;;  %s7572_s29 = scalar_lea.vmem %s7859_s13, %s5047_s21 }
  0xa7   : > { %v1620_v55 = vsel %vm7881_vm1, %v5150_v29, %v6038_v0  ;;  %v1944_v58 = vsel %vm1245_vm3, %v1939_v40, %v6038_v0 }
  0xa8   : > { %v4353_v62 = vadd.f32 %v4321_v13, %v4009_v45  ;;  %v3242_v45 = vsel %vm7895_vm14, %v5313_v39, %v6038_v0  ;;  %v6876_v13 = vadd.s32 %v1013_v36, %v6070_v8  ;;  %vm7896_vm14 = vcmp.lt.s32.totalorder %v6253_v12, 500  ;;  %v5319_v36 = vld [vmem:[%s6618_s15 + $0x50] sm:$0xff] }
  0xa9   : > { %v6823_v59 = vpop.f32.mrf.mxu3  ;;  %v3247_v57 = vsel %vm3114_vm12, %v3242_v45, %v6038_v0  ;;  %vm7897_vm8 = vmmov %vm7896_vm14 }
  0xaa   : > { %5429 = vmatmul.msk.f32.gmra.mxu2 %vm4077_vm5, %v4353_v62  ;;  %v3888_v7 = vpop.f32.mrf.mxu0  ;;  %4455 = vperm.xlu1 %5948, %v3247_v57   ;;  %vm7883_vm6 = vcmp.lt.s32.totalorder %v6876_v13, 500 }
  0xab   : > { %v3889_v10 = vadd.f32 %v6676_v43, %v3888_v7  ;;  %v4200_v18 = vpop.f32.mrf.mxu1 }
  0xac   : > { %v4201_v21 = vadd.f32 %v6690_v52, %v4200_v18 }
  0xad   : > { %v4010_v28 = vmul.f32 %v3889_v10, %v1925_v6  ;;  %5382 = vmatmul.msk.f32.gmra.mxu0 %vm3765_vm0, %v983_v47  ;;  %v2567_v6 = vsel %vm1245_vm3, %v2562_v41, %v6038_v0  ;;  %v1625_v47 = vsel %vm1245_vm3, %v1620_v55, %v6038_v0  ;;  %v5183_v10 = vld [vmem:[%s6647_s22 + $0x28] sm:$0xff]  ;;  %v3299_v41 = vsel %vm806_vm9, %v5319_v36, %v6038_v0 }
  0xae   : > { %v4322_v37 = vmul.f32 %v4201_v21, %v2548_v11  ;;  %5414 = vmatmul.msk.f32.gmra.mxu1 %vm4077_vm5, %v1606_v20  ;;  %v5246_v11 = vld [vmem:[%s6656_s26 + $0x28] sm:$0xff]  ;;  %v1032_v21 = vstv %s5505_s28  ;;  %v1639_v55 = vsel %vm7883_vm6, %v5152_v24, %v6038_v0  ;;  %v3304_v57 = vsel %vm3114_vm12, %v3299_v41, %v6038_v0  ;;  %v5307_v41 = vld [vmem:[%s6618_s15 + $0x20] sm:$0xff] }
  0xaf   : > { %v5089_v20 = vld [vmem:[%s6095_s8 + $0xa8] sm:$0xff]  ;;  %v2581_v29 = vsel %vm7897_vm8, %v5246_v11, %v6038_v0  ;;  %v6916_v40 = vadd.s32 %v1032_v21, %v6070_v8  ;;  %v1644_v11 = vsel %vm1245_vm3, %v1639_v55, %v6038_v0  ;;  %v5154_v21 = vld [vmem:[%s6105_s16 + $0xb0] sm:$0xff]  ;;  %v1051_v24 = vstv %s5507_s30 }
  0xb0   : > { %v4354_v49 = vadd.f32 %v4322_v37, %v4010_v28  ;;  %v1958_v28 = vsel %vm7896_vm14, %v5183_v10, %v6038_v0  ;;  %v5311_v37 = vld [vmem:[%s6618_s15 + $0x30] sm:$0xff]  ;;  %v1016_v39 = vsel %vm7883_vm6, %v5089_v20, %v6038_v0  ;;  %vm7898_vm14 = vcmp.lt.s32.totalorder %v6296_v30, 500 }
  0xb1   : > { %v6870_v46 = vpop.f32.mrf.mxu3  ;;  %v3223_v42 = vsel %vm7898_vm14, %v5311_v37, %v6038_v0  ;;  %v5091_v20 = vld [vmem:[%s6095_s8 + $0xb0] sm:$0xff]  ;;  %vm1034_vm8 = vcmp.lt.s32.totalorder %v6916_v40, 500  ;;  %vm7899_vm1 = vmmov %vm7898_vm14  ;;  %v6974_v55 = vadd.s32 %v1051_v24, %v6070_v8  ;;  %v5093_v24 = vld [vmem:[%s6095_s8 + $0xb8] sm:$0xff]  ;;  %vm7903_vm6 = vcmp.lt.s32.totalorder %v6253_v12, 500 }
  0xb2   : > { %5430 = vmatmul.msk.f32.gmra.mxu2 %vm4077_vm5, %v4354_v49  ;;  %v3891_v62 = vpop.f32.mrf.mxu0  ;;  %4470 = vperm.xlu1 %5948, %v3304_v57   ;;  %v1035_v37 = vsel %vm1034_vm8, %v5091_v20, %v6038_v0 }
  0xb3   : > { %v3892_v1 = vadd.f32 %v6676_v43, %v3891_v62  ;;  %v4203_v7 = vpop.f32.mrf.mxu1  ;;  %v1963_v62 = vsel %vm1245_vm3, %v1958_v28, %v6038_v0 }
  0xb4   : > { %v4204_v18 = vadd.f32 %v6690_v52, %v4203_v7 }
  0xb5   : > { %v4011_v23 = vmul.f32 %v3892_v1, %v1944_v58  ;;  %5383 = vmatmul.msk.f32.gmra.mxu0 %vm3765_vm0, %v1002_v63  ;;  %v3228_v58 = vsel %vm3114_vm12, %v3223_v42, %v6038_v0  ;;  %v1021_v1 = vsel %vm622_vm2, %v1016_v39, %v6038_v0  ;;  %v1658_v39 = vsel %vm1034_vm8, %v5154_v21, %v6038_v0  ;;  %v5325_v42 = vld [vmem:[%s6618_s15 + $0x68] sm:$0xff]  ;;  %v5187_v21 = vld [vmem:[%s6647_s22 + $0x38] sm:$0xff] }
  0xb6   : > { %v4323_v27 = vmul.f32 %v4204_v18, %v2567_v6  ;;  %5415 = vmatmul.msk.f32.gmra.mxu1 %vm4077_vm5, %v1625_v47  ;;  %4450 = vperm.xlu0 %5947, %v3228_v58   ;;  %v5185_v6 = vld [vmem:[%s6647_s22 + $0x30] sm:$0xff]  ;;  %v2586_v47 = vsel %vm1245_vm3, %v2581_v29, %v6038_v0  ;;  %v3356_v30 = vsel %vm7882_vm15, %v5325_v42, %v6038_v0  ;;  %v5309_v42 = vld [vmem:[%s6618_s15 + $0x28] sm:$0xff] }
  0xb7   : > { %v5248_v18 = vld [vmem:[%s6656_s26 + $0x30] sm:$0xff]  ;;  %v1977_v28 = vsel %vm7898_vm14, %v5185_v6, %v6038_v0  ;;  %vm7900_vm14 = vcmp.lt.s32.totalorder %v6216_v60, 500  ;;  %v3361_v60 = vsel %vm3114_vm12, %v3356_v30, %v6038_v0  ;;  %v1663_v20 = vsel %vm1245_vm3, %v1658_v39, %v6038_v0 }
  0xb8   : > { %v4355_v49 = vadd.f32 %v4323_v27, %v4011_v23  ;;  %v2600_v36 = vsel %vm7899_vm1, %v5248_v18, %v6038_v0  ;;  %v3185_v57 = vsel %vm7900_vm14, %v5307_v41, %v6038_v0  ;;  %v1982_v6 = vsel %vm1245_vm3, %v1977_v28, %v6038_v0  ;;  %v5156_v28 = vld [vmem:[%s6105_s16 + $0xb8] sm:$0xff] }
  0xb9   : > { %v6924_v45 = vpop.f32.mrf.mxu3  ;;  %v3190_v8 = vsel %vm3114_vm12, %v3185_v57, %v6038_v0  ;;  %vm1053_vm1 = vcmp.lt.s32.totalorder %v6974_v55, 500  ;;  %vm7901_vm14 = vcmp.lt.s32.totalorder %v6344_v50, 500  ;;  %v5323_v57 = vld [vmem:[%s6618_s15 + $0x60] sm:$0xff] }
  0xba   : > { %5431 = vmatmul.msk.f32.gmra.mxu2 %vm4077_vm5, %v4355_v49  ;;  %v3894_v63 = vpop.f32.mrf.mxu0  ;;  %v5317_v49 = vld [vmem:[%s6618_s15 + $0x48] sm:$0xff]  ;;  %4440 = vperm.xlu2 %5949, %v3190_v8   ;;  %vm7902_vm15 = vmmov %vm7901_vm14  ;;  %v1054_v41 = vsel %vm1053_vm1, %v5093_v24, %v6038_v0  ;;  %v1677_v30 = vsel %vm1053_vm1, %v5156_v28, %v6038_v0  ;;  %v5252_v24 = vld [vmem:[%s6656_s26 + $0x40] sm:$0xff] }
  0xbb   : > { %v3895_v7 = vadd.f32 %v6676_v43, %v3894_v63  ;;  %v4206_v10 = vpop.f32.mrf.mxu1  ;;  %v3280_v58 = vsel %vm787_vm7, %v5317_v49, %v6038_v0  ;;  %4485 = vperm.xlu1 %5948, %v3361_v60   ;;  %v5331_v49 = vld [vmem:[%s6618_s15 + $0x80] sm:$0xff] }
  0xbc   : > { %v4207_v23 = vadd.f32 %v6690_v52, %v4206_v10  ;;  %v3413_v50 = vsel %vm920_vm11, %v5331_v49, %v6038_v0  ;;  %v5158_v28 = vld [vmem:[%s6105_s16 + $0xc0] sm:$0xff]  ;;  %v5329_v49 = vld [vmem:[%s6618_s15 + $0x78] sm:$0xff] }
  0xbd   : > { %v4012_v27 = vmul.f32 %v3895_v7, %v1963_v62  ;;  %5384 = vmatmul.msk.f32.gmra.mxu0 %vm3765_vm0, %v1021_v1  ;;  %v3285_v1 = vsel %vm3114_vm12, %v3280_v58, %v6038_v0  ;;  %v3204_v58 = vsel %vm7903_vm6, %v5309_v42, %v6038_v0  ;;  %v3418_v12 = vsel %vm3114_vm12, %v3413_v50, %v6038_v0  ;;  %v5337_v42 = vld [vmem:[%s6618_s15 + $0x98] sm:$0xff] }
  0xbe   : > { %v4324_v29 = vmul.f32 %v4207_v23, %v2586_v47  ;;  %5416 = vmatmul.msk.f32.gmra.mxu1 %vm4077_vm5, %v1644_v11  ;;  %v1040_v47 = vsel %vm622_vm2, %v1035_v37, %v6038_v0  ;;  %4465 = vperm.xlu0 %5947, %v3285_v1   ;;  %v2605_v11 = vsel %vm1245_vm3, %v2600_v36, %v6038_v0  ;;  %v5250_v23 = vld [vmem:[%s6656_s26 + $0x38] sm:$0xff]  ;;  %vm7906_vm6 = vcmp.lt.s32.totalorder %v6081_v14, 500 }
  0xbf   : > { %v1996_v37 = vsel %vm7901_vm14, %v5187_v21, %v6038_v0  ;;  %v2619_v39 = vsel %vm7902_vm15, %v5250_v23, %v6038_v0  ;;  %v3209_v1 = vsel %vm3114_vm12, %v3204_v58, %v6038_v0  ;;  %v1682_v21 = vsel %vm1245_vm3, %v1677_v30, %v6038_v0  ;;  %v5189_v23 = vld [vmem:[%s6647_s22 + $0x40] sm:$0xff] }
  0xc0   : > { %v4356_v63 = vadd.f32 %v4324_v29, %v4012_v27  ;;  %v1696_v30 = vsel %vm7906_vm6, %v5158_v28, %v6038_v0  ;;  %vm7908_vm14 = vcmp.lt.s32.totalorder %v6789_v34, 500 }
  0xc1   : > { %v6985_v62 = vpop.f32.mrf.mxu3  ;;  %v3470_v50 = vsel %vm7908_vm14, %v5337_v42, %v6038_v0  ;;  %vm7913_vm14 = vcmp.lt.s32.totalorder %v6742_v15, 500 }
  0xc2   : > { %5432 = vmatmul.msk.f32.gmra.mxu2 %vm4077_vm5, %v4356_v63  ;;  %v3897_v7 = vpop.f32.mrf.mxu0  ;;  %v3337_v63 = vsel %vm844_vm13, %v5323_v57, %v6038_v0  ;;  %4445 = vperm.xlu2 %5949, %v3209_v1   ;;  %v5223_v57 = vld [vmem:[%s6647_s22 + $0xc8] sm:$0xff] }
  0xc3   : > { %v3898_v10 = vadd.f32 %v6676_v43, %v3897_v7  ;;  %v4209_v18 = vpop.f32.mrf.mxu1  ;;  %4500 = vperm.xlu1 %5948, %v3418_v12   ;;  %v2001_v7 = vsel %vm1245_vm3, %v1996_v37, %v6038_v0  ;;  %v5286_v12 = vld [vmem:[%s6656_s26 + $0xc8] sm:$0xff] }
  0xc4   : > { %v4210_v27 = vadd.f32 %v6690_v52, %v4209_v18  ;;  %v2624_v18 = vsel %vm1245_vm3, %v2619_v39, %v6038_v0 }
  0xc5   : > { %v4013_v29 = vmul.f32 %v3898_v10, %v1982_v6  ;;  %5385 = vmatmul.msk.f32.gmra.mxu0 %vm3765_vm0, %v1040_v47  ;;  %v3342_v6 = vsel %vm3114_vm12, %v3337_v63, %v6038_v0  ;;  %v1059_v10 = vsel %vm622_vm2, %v1054_v41, %v6038_v0  ;;  %vm7904_vm2 = vcmp.lt.s32.totalorder %v6385_v3, 500  ;;  %v5315_v41 = vld [vmem:[%s6618_s15 + $0x40] sm:$0xff] }
  0xc6   : > { %v4325_v36 = vmul.f32 %v4210_v27, %v2605_v11  ;;  %5417 = vmatmul.msk.f32.gmra.mxu1 %vm4077_vm5, %v1663_v20  ;;  %4480 = vperm.xlu0 %5947, %v3342_v6   ;;  %v2015_v37 = vsel %vm7904_vm2, %v5189_v23, %v6038_v0  ;;  %vm7905_vm15 = vmmov %vm7904_vm2  ;;  %v3475_v3 = vsel %vm3114_vm12, %v3470_v50, %v6038_v0 }
  0xc7   : > { %v2638_v39 = vsel %vm7905_vm15, %v5252_v24, %v6038_v0  ;;  %vm7910_vm15 = vcmp.lt.s32.totalorder %v6089_v16, 500  ;;  %v1701_v23 = vsel %vm1245_vm3, %v1696_v30, %v6038_v0  ;;  %v5343_v30 = vld [vmem:[%s6618_s15 + $0xb0] sm:$0xff] }
  0xc8   : > { %v4357_v60 = vadd.f32 %v4325_v36, %v4013_v29  ;;  %vm7911_vm6 = vmmov %vm7910_vm15 }
  0xc9   : > { %v7042_v8 = vpop.f32.mrf.mxu3  ;;  %v2961_v24 = vsel %vm7911_vm6, %v5286_v12, %v6038_v0 }
  0xca   : > { %5433 = vmatmul.msk.f32.gmra.mxu2 %vm4077_vm5, %v4357_v60  ;;  %v3900_v47 = vpop.f32.mrf.mxu0  ;;  %v2966_v42 = vsel %vm1245_vm3, %v2961_v24, %v6038_v0 }
  0xcb   : > { %v3901_v11 = vadd.f32 %v6676_v43, %v3900_v47  ;;  %v4212_v20 = vpop.f32.mrf.mxu1  ;;  %4515 = vperm.xlu1 %5948, %v3475_v3   ;;  %v2338_v47 = vsel %vm7910_vm15, %v5223_v57, %v6038_v0  ;;  %v5321_v57 = vld [vmem:[%s6618_s15 + $0x58] sm:$0xff]  ;;  %vm7916_vm15 = vcmp.lt.s32.totalorder %v6566_v44, 500 }
  0xcc   : > { %v4213_v27 = vadd.f32 %v6690_v52, %v4212_v20  ;;  %v2643_v20 = vsel %vm1245_vm3, %v2638_v39, %v6038_v0  ;;  %v2343_v39 = vsel %vm1245_vm3, %v2338_v47, %v6038_v0 }
  0xcd   : > { %v4014_v29 = vmul.f32 %v3901_v11, %v2001_v7  ;;  %5386 = vmatmul.msk.f32.gmra.mxu0 %vm3765_vm0, %v1059_v10  ;;  %vm7907_vm0 = vmmov %vm7904_vm2  ;;  %vm7909_vm2 = vcmp.lt.s32.totalorder %v6602_v2, 500  ;;  %v2020_v10 = vsel %vm1245_vm3, %v2015_v37, %v6038_v0 }
  0xce   : > { %v4326_v36 = vmul.f32 %v4213_v27, %v2624_v18  ;;  %5418 = vmatmul.msk.f32.gmra.mxu1 %vm4077_vm5, %v1682_v21  ;;  %v3261_v58 = vsel %vm7907_vm0, %v5315_v41, %v6038_v0  ;;  %v3394_v63 = vsel %vm7909_vm2, %v5329_v49, %v6038_v0  ;;  %v5191_v27 = vld [vmem:[%s6647_s22 + $0x48] sm:$0xff]  ;;  %vm7912_vm0 = vcmp.lt.s32.totalorder %v6472_v54, 500 }
  0xcf   : > { %v3266_v6 = vsel %vm3114_vm12, %v3261_v58, %v6038_v0  ;;  %v3399_v7 = vsel %vm3114_vm12, %v3394_v63, %v6038_v0  ;;  %v2034_v49 = vsel %vm787_vm7, %v5191_v27, %v6038_v0  ;;  %v5225_v58 = vld [vmem:[%s6647_s22 + $0xd0] sm:$0xff]  ;;  %v3318_v63 = vsel %vm7912_vm0, %v5321_v57, %v6038_v0 }
  0xd0   : > { %v4358_v1 = vadd.f32 %v4326_v36, %v4014_v29  ;;  %4460 = vperm.xlu2 %5949, %v3266_v6   ;;  %4495 = vperm.xlu0 %5947, %v3399_v7   ;;  %v5254_v29 = vld [vmem:[%s6656_s26 + $0x48] sm:$0xff]  ;;  %v3955_v36 = vadd.f32 %v6676_v43, %v6783_v19  ;;  %v5335_v19 = vld [vmem:[%s6618_s15 + $0x90] sm:$0xff]  ;;  %v3323_v22 = vsel %vm3114_vm12, %v3318_v63, %v6038_v0  ;;  %vm7917_vm0 = vcmp.lt.s32.totalorder %v6876_v13, 500 }
  0xd1   : > { %v7095_v60 = vpop.f32.mrf.mxu3  ;;  %v2657_v50 = vsel %vm787_vm7, %v5254_v29, %v6038_v0  ;;  %v3451_v12 = vsel %vm7913_vm14, %v5335_v19, %v6038_v0  ;;  %v5288_v7 = vld [vmem:[%s6656_s26 + $0xd0] sm:$0xff]  ;;  %vm7914_vm7 = vcmp.lt.s32.totalorder %v6151_v35, 500 }
  0xd2   : > { %5434 = vmatmul.msk.f32.gmra.mxu2 %vm4077_vm5, %v4358_v1  ;;  %v3903_v11 = vpop.f32.mrf.mxu0  ;;  %v3527_v1 = vsel %vm1034_vm8, %v5343_v30, %v6038_v0  ;;  %vm7915_vm2 = vmmov %vm7914_vm7  ;;  %v5327_v63 = vld [vmem:[%s6618_s15 + $0x70] sm:$0xff] }
  0xd3   : > { %v3904_v18 = vadd.f32 %v6676_v43, %v3903_v11  ;;  %v4215_v21 = vpop.f32.mrf.mxu1  ;;  %v3532_v47 = vsel %vm3114_vm12, %v3527_v1, %v6038_v0  ;;  %v4032_v11 = vmul.f32 %v3955_v36, %v2343_v39  ;;  %v2980_v36 = vsel %vm7915_vm2, %v5288_v7, %v6038_v0  ;;  %v5349_v1 = vld [vmem:[%s6618_s15 + $0xc8] sm:$0xff] }
  0xd4   : > { %v4216_v28 = vadd.f32 %v6690_v52, %v4215_v21  ;;  %4530 = vperm.xlu1 %5948, %v3532_v47   ;;  %v2039_v21 = vsel %vm1245_vm3, %v2034_v49, %v6038_v0  ;;  %vm7921_vm2 = vcmp.lt.s32.totalorder %v6696_v56, 500 }
  0xd5   : > { %v4015_v37 = vmul.f32 %v3904_v18, %v2020_v10  ;;  %v3456_v10 = vsel %vm3114_vm12, %v3451_v12, %v6038_v0  ;;  %v5341_v12 = vld [vmem:[%s6618_s15 + $0xa8] sm:$0xff] }
  0xd6   : > { %v4327_v41 = vmul.f32 %v4216_v28, %v2643_v20  ;;  %5419 = vmatmul.msk.f32.gmra.mxu1 %vm4077_vm5, %v1701_v23  ;;  %v2357_v20 = vsel %vm7914_vm7, %v5225_v58, %v6038_v0  ;;  %v2662_v28 = vsel %vm1245_vm3, %v2657_v50, %v6038_v0  ;;  %v2985_v58 = vsel %vm1245_vm3, %v2980_v36, %v6038_v0 }
  0xd7   : > { %v2362_v30 = vsel %vm1245_vm3, %v2357_v20, %v6038_v0  ;;  %v3508_v7 = vsel %vm7917_vm0, %v5341_v12, %v6038_v0  ;;  %v5229_v12 = vld [vmem:[%s6647_s22 + $0xe0] sm:$0xff]  ;;  %vm7920_vm7 = vcmp.lt.s32.totalorder %v6472_v54, 500  ;;  %vm7924_vm0 = vcmp.lt.s32.totalorder %v6219_v61, 500 }
  0xd8   : > { %v4359_v3 = vadd.f32 %v4327_v41, %v4015_v37  ;;  %4475 = vperm.xlu2 %5949, %v3323_v22   ;;  %4510 = vperm.xlu0 %5947, %v3456_v10   ;;  %v5193_v37 = vld [vmem:[%s6647_s22 + $0x50] sm:$0xff]  ;;  %v5227_v22 = vld [vmem:[%s6647_s22 + $0xd8] sm:$0xff]  ;;  %v3513_v16 = vsel %vm3114_vm12, %v3508_v7, %v6038_v0  ;;  %v2395_v54 = vsel %vm7924_vm0, %v5229_v12, %v6038_v0 }
  0xd9   : > { %v4266_v6 = vpop.f32.mrf.mxu3  ;;  %v5256_v41 = vld [vmem:[%s6656_s26 + $0x50] sm:$0xff]  ;;  %v2053_v50 = vsel %vm806_vm9, %v5193_v37, %v6038_v0 }
  0xda   : > { %v4267_v18 = vadd.f32 %v6690_v52, %v4266_v6  ;;  %5435 = vmatmul.msk.f32.gmra.mxu2 %vm4077_vm5, %v4359_v3  ;;  %v3906_v23 = vpop.f32.mrf.mxu0  ;;  %v3375_v6 = vsel %vm7916_vm15, %v5327_v63, %v6038_v0  ;;  %v3584_v3 = vsel %vm7911_vm6, %v5349_v1, %v6038_v0  ;;  %v5333_v63 = vld [vmem:[%s6618_s15 + $0x88] sm:$0xff]  ;;  %v5347_v1 = vld [vmem:[%s6618_s15 + $0xc0] sm:$0xff]  ;;  %vm7922_vm15 = vcmp.lt.s32.totalorder %v6081_v14, 500  ;;  %vm7923_vm6 = vmmov %vm7920_vm7 }
  0xdb   : > { %v3907_v27 = vadd.f32 %v6676_v43, %v3906_v23  ;;  %v4218_v29 = vpop.f32.mrf.mxu1  ;;  %v3380_v38 = vsel %vm3114_vm12, %v3375_v6, %v6038_v0  ;;  %v2058_v23 = vsel %vm1245_vm3, %v2053_v50, %v6038_v0  ;;  %v3432_v6 = vsel %vm7921_vm2, %v5333_v63, %v6038_v0  ;;  %v5339_v63 = vld [vmem:[%s6618_s15 + $0xa0] sm:$0xff] }
  0xdc   : > { %v4344_v24 = vmul.f32 %v4267_v18, %v2966_v42  ;;  %v4219_v39 = vadd.f32 %v6690_v52, %v4218_v29  ;;  %v3958_v42 = vadd.f32 %v6676_v43, %v6823_v59  ;;  %v2676_v59 = vsel %vm806_vm9, %v5256_v41, %v6038_v0 }
  0xdd   : > { %v4016_v57 = vmul.f32 %v3907_v27, %v2039_v21  ;;  %v5290_v21 = vld [vmem:[%s6656_s26 + $0xd8] sm:$0xff]  ;;  %vm7918_vm9 = vcmp.lt.s32.totalorder %v6185_v48, 500  ;;  %v2681_v36 = vsel %vm1245_vm3, %v2676_v59, %v6038_v0  ;;  %vm7928_vm2 = vcmp.lt.s32.totalorder %v6185_v48, 500 }
  0xde   : > { %v4376_v49 = vadd.f32 %v4344_v24, %v4032_v11  ;;  %v4328_v19 = vmul.f32 %v4219_v39, %v2662_v28  ;;  %v3589_v11 = vsel %vm3114_vm12, %v3584_v3, %v6038_v0  ;;  %v4033_v18 = vmul.f32 %v3958_v42, %v2362_v30  ;;  %vm7919_vm14 = vmmov %vm7918_vm9  ;;  %v5195_v42 = vld [vmem:[%s6647_s22 + $0x58] sm:$0xff] }
  0xdf   : > { %4545 = vperm.xlu1 %5948, %v3589_v11   ;;  %v2376_v27 = vsel %vm7918_vm9, %v5227_v22, %v6038_v0  ;;  %v2999_v41 = vsel %vm7919_vm14, %v5290_v21, %v6038_v0  ;;  %v3565_v3 = vsel %vm7922_vm15, %v5347_v1, %v6038_v0  ;;  %vm7925_vm9 = vmmov %vm7924_vm0  ;;  %v5353_v1 = vld [vmem:[%s6618_s15 + $0xd8] sm:$0xff]  ;;  %vm7926_vm14 = vcmp.lt.s32.totalorder %v6832_v4, 500 }
  0xe0   : > { %5452 = vmatmul.msk.f32.vlgmr.msra.gmra.mxu3 %vm4077_vm5, %v4376_v49  ;;  %v4360_v10 = vadd.f32 %v4328_v19, %v4016_v57  ;;  %4490 = vperm.xlu2 %5949, %v3380_v38   ;;  %v3961_v49 = vadd.f32 %v6676_v43, %v6870_v46  ;;  %v5258_v19 = vld [vmem:[%s6656_s26 + $0x58] sm:$0xff]  ;;  %v3004_v59 = vsel %vm1245_vm3, %v2999_v41, %v6038_v0 }
  0xe1   : > { %v4269_v47 = vpop.f32.mrf.mxu3  ;;  %4525 = vperm.xlu0 %5947, %v3513_v16   ;;  %v2072_v46 = vsel %vm7920_vm7, %v5195_v42, %v6038_v0  ;;  %v3437_v38 = vsel %vm3114_vm12, %v3432_v6, %v6038_v0  ;;  %v3570_v11 = vsel %vm3114_vm12, %v3565_v3, %v6038_v0  ;;  %v3964_v41 = vadd.f32 %v6676_v43, %v6924_v45  ;;  %v5231_v42 = vld [vmem:[%s6647_s22 + $0xe8] sm:$0xff]  ;;  %v5355_v45 = vld [vmem:[%s6618_s15 + $0xe0] sm:$0xff]  ;;  %vm7927_vm7 = vmmov %vm7924_vm0 }
  0xe2   : > { %v4270_v20 = vadd.f32 %v6690_v52, %v4269_v47  ;;  %5436 = vmatmul.msk.f32.gmra.mxu2 %vm4077_vm5, %v4360_v10  ;;  %v3909_v24 = vpop.f32.mrf.mxu0  ;;  %v2695_v47 = vsel %vm7923_vm6, %v5258_v19, %v6038_v0  ;;  %v5292_v10 = vld [vmem:[%s6656_s26 + $0xe0] sm:$0xff]  ;;  %v3641_v6 = vsel %vm7927_vm7, %v5355_v45, %v6038_v0  ;;  %v3622_v3 = vsel %vm7928_vm2, %v5353_v1, %v6038_v0  ;;  %v5296_v1 = vld [vmem:[%s6656_s26 + $0xf0] sm:%s6280_s20] }
  0xe3   : > { %v3910_v29 = vadd.f32 %v6676_v43, %v3909_v24  ;;  %v4221_v37 = vpop.f32.mrf.mxu1  ;;  %vm7931_vm6 = vcmp.lt.s32.totalorder %v6530_v25, 500  ;;  %vm7937_vm2 = vcmp.lt.s32.totalorder %v6566_v44, 500 }
  0xe4   : > { %v4345_v28 = vmul.f32 %v4270_v20, %v2985_v58  ;;  %v4222_v39 = vadd.f32 %v6690_v52, %v4221_v37  ;;  %v2381_v58 = vsel %vm1245_vm3, %v2376_v27, %v6038_v0  ;;  %v2077_v20 = vsel %vm1245_vm3, %v2072_v46, %v6038_v0  ;;  %vm7932_vm0 = vmmov %vm7931_vm6 }
  0xe5   : > { %v4017_v57 = vmul.f32 %v3910_v29, %v2058_v23  ;;  %v4034_v16 = vmul.f32 %v3961_v49, %v2381_v58  ;;  %v2700_v27 = vsel %vm1245_vm3, %v2695_v47, %v6038_v0  ;;  %v3018_v29 = vsel %vm7925_vm9, %v5292_v10, %v6038_v0 }
  0xe6   : > { %v4377_v30 = vadd.f32 %v4345_v28, %v4033_v18  ;;  %v4329_v50 = vmul.f32 %v4222_v39, %v2681_v36  ;;  %v5197_v36 = vld [vmem:[%s6647_s22 + $0x60] sm:$0xff]  ;;  %v3023_v58 = vsel %vm1245_vm3, %v3018_v29, %v6038_v0  ;;  %v3489_v46 = vsel %vm7926_vm14, %v5339_v63, %v6038_v0 }
  0xe7   : > { %v5260_v39 = vld [vmem:[%s6656_s26 + $0x60] sm:$0xff]  ;;  %v3494_v5 = vsel %vm3114_vm12, %v3489_v46, %v6038_v0  ;;  %v3646_v47 = vsel %vm3114_vm12, %v3641_v6, %v6038_v0  ;;  %v3627_v10 = vsel %vm3114_vm12, %v3622_v3, %v6038_v0  ;;  %vm7933_vm9 = vcmp.lt.s32.totalorder %v6347_v51, 500 }
  0xe8   : > { %5453 = vmatmul.msk.f32.gmra.mxu3 %vm4077_vm5, %v4377_v30  ;;  %v4361_v22 = vadd.f32 %v4329_v50, %v4017_v57  ;;  %4505 = vperm.xlu2 %5949, %v3437_v38   ;;  %v2400_v30 = vsel %vm1245_vm3, %v2395_v54, %v6038_v0  ;;  %v2091_v50 = vsel %vm844_vm13, %v5197_v36, %v6038_v0  ;;  %v5233_v38 = vld [vmem:[%s6647_s22 + $0xf0] sm:%s6280_s20]  ;;  %vm7934_vm14 = vcmp.lt.s32.totalorder %v6299_v31, 500 }
  0xe9   : > { %v4272_v7 = vpop.f32.mrf.mxu3  ;;  %4540 = vperm.xlu0 %5947, %v3570_v11   ;;  %v2714_v12 = vsel %vm844_vm13, %v5260_v39, %v6038_v0  ;;  %v4035_v61 = vmul.f32 %v3964_v41, %v2400_v30  ;;  %vm7929_vm13 = vcmp.lt.s32.totalorder %v6256_v17, 500  ;;  %4560 = vperm.xlu1 %5948, %v3646_v47   ;;  %v2434_v29 = vsel %vm6303_vm4, %v6038_v0, %v5233_v38  ;;  %v5359_v30 = vld [vmem:[%s6618_s15 + $0xf0] sm:%s6280_s20]  ;;  %vm7935_vm7 = vmmov %vm7934_vm14 }
  0xea   : > { %v4273_v18 = vadd.f32 %v6690_v52, %v4272_v7  ;;  %5437 = vmatmul.msk.f32.gmra.mxu2 %vm4077_vm5, %v4361_v22  ;;  %v3912_v21 = vpop.f32.mrf.mxu0  ;;  %v2414_v48 = vsel %vm7929_vm13, %v5231_v42, %v6038_v0  ;;  %vm7930_vm15 = vmmov %vm7929_vm13  ;;  %v3967_v39 = vadd.f32 %v6676_v43, %v6985_v62  ;;  %v3680_v62 = vsel %vm6303_vm4, %v6038_v0, %v5359_v30 }
  0xeb   : > { %v3913_v24 = vadd.f32 %v6676_v43, %v3912_v21  ;;  %v4224_v28 = vpop.f32.mrf.mxu1  ;;  %v3688_v46 = vsel %vm7934_vm14, %v3680_v62, %v6038_v0  ;;  %v2442_v38 = vsel %vm7935_vm7, %v2434_v29, %v6038_v0  ;;  %v5264_v29 = vld [vmem:[%s6656_s26 + $0x70] sm:$0xff]  ;;  %vm7938_vm13 = vcmp.lt.s32.totalorder %v6151_v35, 500 }
  0xec   : > { %v4346_v23 = vmul.f32 %v4273_v18, %v3004_v59  ;;  %v4225_v37 = vadd.f32 %v6690_v52, %v4224_v28  ;;  %v5294_v59 = vld [vmem:[%s6656_s26 + $0xe8] sm:$0xff]  ;;  %v2419_v28 = vsel %vm1245_vm3, %v2414_v48, %v6038_v0  ;;  %v3057_v48 = vsel %vm6303_vm4, %v6038_v0, %v5296_v1  ;;  %vm7936_vm4 = vmmov %vm7935_vm7 }
  0xed   : > { %v4018_v49 = vmul.f32 %v3913_v24, %v2077_v20  ;;  %v3037_v54 = vsel %vm7930_vm15, %v5294_v59, %v6038_v0  ;;  %vm7939_vm15 = vmmov %vm7937_vm2  ;;  %vm7945_vm14 = vcmp.lt.s32.totalorder %v6256_v17, 500 }
  0xee   : > { %v4378_v57 = vadd.f32 %v4346_v23, %v4034_v16  ;;  %v4330_v19 = vmul.f32 %v4225_v37, %v2700_v27  ;;  %v2096_v16 = vsel %vm1245_vm3, %v2091_v50, %v6038_v0  ;;  %v2719_v23 = vsel %vm1245_vm3, %v2714_v12, %v6038_v0  ;;  %v5199_v27 = vld [vmem:[%s6647_s22 + $0x68] sm:$0xff]  ;;  %v5345_v50 = vld [vmem:[%s6618_s15 + $0xb8] sm:$0xff] }
  0xef   : > { %v5262_v37 = vld [vmem:[%s6656_s26 + $0x68] sm:$0xff]  ;;  %v3546_v12 = vsel %vm1053_vm1, %v5345_v50, %v6038_v0 }
  0xf0   : > { %5454 = vmatmul.msk.f32.gmra.mxu3 %vm4077_vm5, %v4378_v57  ;;  %v4362_v22 = vadd.f32 %v4330_v19, %v4018_v49  ;;  %4520 = vperm.xlu2 %5949, %v3494_v5   ;;  %v3042_v49 = vsel %vm1245_vm3, %v3037_v54, %v6038_v0  ;;  %v5361_v57 = vld [vmem:[%s6618_s15 + $0xf8] sm:%s6330_s24]  ;;  %v2733_v45 = vsel %vm7932_vm0, %v5262_v37, %v6038_v0  ;;  %vm7942_vm0 = vcmp.lt.s32.totalorder %v6602_v2, 500  ;;  %v7494_v2 = vld [vmem:[%s7848_s2] ss:$0 sm:$0xff] }
  0xf1   : > { %v4275_v7 = vpop.f32.mrf.mxu3  ;;  %4555 = vperm.xlu0 %5947, %v3627_v10   ;;  %v3708_v63 = vsel %vm6351_vm10, %v6038_v0, %v5361_v57  ;;  %v3551_v25 = vsel %vm3114_vm12, %v3546_v12, %v6038_v0  ;;  %v4036_v5 = vmul.f32 %v3967_v39, %v2419_v28  ;;  %v3065_v28 = vsel %vm7936_vm4, %v3057_v48, %v6038_v0  ;;  %v5351_v39 = vld [vmem:[%s6618_s15 + $0xd0] sm:$0xff] }
  0xf2   : > { %v4276_v11 = vadd.f32 %v6690_v52, %v4275_v7  ;;  %5438 = vmatmul.msk.f32.gmra.mxu2 %vm4077_vm5, %v4362_v22  ;;  %v3915_v18 = vpop.f32.mrf.mxu0  ;;  %v3716_v59 = vsel %vm7933_vm9, %v3708_v63, %v6038_v0  ;;  %v3693_v22 = vsel %vm3114_vm12, %v3688_v46, %v6038_v0  ;;  %v3603_v31 = vsel %vm7938_vm13, %v5351_v39, %v6038_v0 }
  0xf3   : > { %v3916_v21 = vadd.f32 %v6676_v43, %v3915_v18  ;;  %v4227_v24 = vpop.f32.mrf.mxu1  ;;  %v3721_v7 = vsel %vm3114_vm12, %v3716_v59, %v6038_v0  ;;  %v2738_v18 = vsel %vm1245_vm3, %v2733_v45, %v6038_v0 }
  0xf4   : > { %v4347_v20 = vmul.f32 %v4276_v11, %v3023_v58  ;;  %v4228_v36 = vadd.f32 %v6690_v52, %v4227_v24  ;;  %v2110_v58 = vsel %vm7931_vm6, %v5199_v27, %v6038_v0  ;;  %4575 = vperm.xlu1 %5948, %v3721_v7   ;;  %vm7940_vm6 = vmmov %vm7933_vm9 }
  0xf5   : > { %v4019_v41 = vmul.f32 %v3916_v21, %v2096_v16  ;;  %v2115_v10 = vsel %vm1245_vm3, %v2110_v58, %v6038_v0  ;;  %v5201_v21 = vld [vmem:[%s6647_s22 + $0x70] sm:$0xff]  ;;  %v3608_v58 = vsel %vm3114_vm12, %v3603_v31, %v6038_v0  ;;  %vm7943_vm9 = vmmov %vm7942_vm0 }
  0xf6   : > { %v4379_v42 = vadd.f32 %v4347_v20, %v4035_v61  ;;  %v4331_v19 = vmul.f32 %v4228_v36, %v2719_v23  ;;  %v5235_v20 = vld [vmem:[%s6647_s22 + $0xf8] sm:%s6330_s24]  ;;  %v3970_v23 = vadd.f32 %v6676_v43, %v7042_v8  ;;  %v2447_v36 = vsel %vm1245_vm3, %v2442_v38, %v6038_v0  ;;  %v7484_v38 = vld [vmem:[%s7849_s3] ss:$0 sm:$0xff] }
  0xf7   : > { %v2129_v8 = vsel %vm7937_vm2, %v5201_v21, %v6038_v0  ;;  %vm7949_vm2 = vcmp.lt.s32.totalorder %v6789_v34, 500 }
  0xf8   : > { %5455 = vmatmul.msk.f32.gmra.mxu3 %vm4077_vm5, %v4379_v42  ;;  %v4363_v3 = vadd.f32 %v4331_v19, %v4019_v41  ;;  %4535 = vperm.xlu2 %5949, %v3551_v25   ;;  %v2462_v41 = vsel %vm6351_vm10, %v6038_v0, %v5235_v20  ;;  %v5298_v42 = vld [vmem:[%s6656_s26 + $0xf8] sm:%s6330_s24]  ;;  %v2752_v19 = vsel %vm7939_vm15, %v5264_v29, %v6038_v0  ;;  %v5268_v29 = vld [vmem:[%s6656_s26 + $0x80] sm:$0xff]  ;;  %vm7950_vm13 = vmmov %vm7949_vm2  ;;  %vm7951_vm15 = vcmp.lt.s32.totalorder %v6832_v4, 500 }
  0xf9   : > { %v4278_v6 = vpop.f32.mrf.mxu3  ;;  %4570 = vperm.xlu0 %5947, %v3693_v22   ;;  %v4037_v50 = vmul.f32 %v3970_v23, %v2447_v36  ;;  %v2134_v35 = vsel %vm1245_vm3, %v2129_v8, %v6038_v0  ;;  %v3085_v44 = vsel %vm6351_vm10, %v6038_v0, %v5298_v42  ;;  %v2470_v45 = vsel %vm7940_vm6, %v2462_v41, %v6038_v0  ;;  %vm7941_vm10 = vmmov %vm7940_vm6 }
  0xfa   : > { %v4279_v47 = vadd.f32 %v6690_v52, %v4278_v6  ;;  %5439 = vmatmul.msk.f32.gmra.mxu2 %vm4077_vm5, %v4363_v3  ;;  %v3918_v61 = vpop.f32.mrf.mxu0  ;;  %v2757_v59 = vsel %vm1245_vm3, %v2752_v19, %v6038_v0  ;;  %v5203_v3 = vld [vmem:[%s6647_s22 + $0x78] sm:$0xff]  ;;  %v3973_v25 = vadd.f32 %v6676_v43, %v7095_v60  ;;  %v3093_v22 = vsel %vm7941_vm10, %v3085_v44, %v6038_v0  ;;  %v5207_v19 = vld [vmem:[%s6647_s22 + $0x88] sm:$0xff]  ;;  %vm7952_vm6 = vmmov %vm7951_vm15 }
  0xfb   : > { %v3919_v16 = vadd.f32 %v6676_v43, %v3918_v61  ;;  %v4230_v54 = vpop.f32.mrf.mxu1  ;;  %v2790_v41 = vsel %vm920_vm11, %v5268_v29, %v6038_v0  ;;  %v5357_v44 = vld [vmem:[%s6618_s15 + $0xe8] sm:$0xff]  ;;  %vm7953_vm10 = vcmp.lt.s32.totalorder %v6876_v13, 500 }
  0xfc   : > { %v4348_v11 = vmul.f32 %v4279_v47, %v3042_v49  ;;  %v4231_v33 = vadd.f32 %v6690_v52, %v4230_v54  ;;  %v3070_v49 = vsel %vm1245_vm3, %v3065_v28, %v6038_v0  ;;  %v2475_v47 = vsel %vm1245_vm3, %v2470_v45, %v6038_v0 }
  0xfd   : > { %v4020_v24 = vmul.f32 %v3919_v16, %v2115_v10  ;;  %v4038_v48 = vmul.f32 %v3973_v25, %v2475_v47  ;;  %v5209_v47 = vld [vmem:[%s6647_s22 + $0x90] sm:$0xff] }
  0xfe   : > { %v4380_v27 = vadd.f32 %v4348_v11, %v4036_v5  ;;  %v4332_v37 = vmul.f32 %v4231_v33, %v2738_v18  ;;  %v5266_v5 = vld [vmem:[%s6656_s26 + $0x78] sm:$0xff] }
  0xff   : > { %v2771_v61 = vsel %vm7943_vm9, %v5266_v5, %v6038_v0  ;;  %v7558_v5 = vld [vmem:[%s7852_s6] ss:$0 sm:$0xff] }
 0x100   : > { %5456 = vmatmul.msk.f32.gmra.mxu3 %vm4077_vm5, %v4380_v27  ;;  %v4364_v30 = vadd.f32 %v4332_v37, %v4020_v24  ;;  %4550 = vperm.xlu2 %5949, %v3608_v58   ;;  %v2776_v33 = vsel %vm1245_vm3, %v2771_v61, %v6038_v0  ;;  %v5205_v24 = vld [vmem:[%s6647_s22 + $0x80] sm:$0xff] }
 0x101   : > { %v4281_v57 = vpop.f32.mrf.mxu3  ;;  %v2167_v37 = vsel %vm920_vm11, %v5205_v24, %v6038_v0  ;;  %vm7944_vm11 = vcmp.lt.s32.totalorder %v6696_v56, 500 }
 0x102   : > { %v4282_v63 = vadd.f32 %v6690_v52, %v4281_v57  ;;  %5440 = vmatmul.msk.f32.gmra.mxu2 %vm4077_vm5, %v4364_v30  ;;  %v3921_v62 = vpop.f32.mrf.mxu0  ;;  %v2172_v8 = vsel %vm1245_vm3, %v2167_v37, %v6038_v0  ;;  %v7514_v31 = vpop.permute.xlu1 %4430  ;;  %v2795_v57 = vsel %vm1245_vm3, %v2790_v41, %v6038_v0  ;;  %v2186_v45 = vsel %vm7944_vm11, %v5207_v19, %v6038_v0  ;;  %vm7946_vm7 = vmmov %vm7944_vm11 }
 0x103   : > { %v3922_v12 = vadd.f32 %v6676_v43, %v3921_v62  ;;  %v4233_v46 = vpop.f32.mrf.mxu1  ;;  %v3098_v43 = vsel %vm1245_vm3, %v3093_v22, %v6038_v0  ;;  %v7526_v62 = vld [vmem:[%s7851_s5] ss:$0 sm:$0xff]  ;;  %v2191_v17 = vsel %vm1245_vm3, %v2186_v45, %v6038_v0 }
 0x104   : > { %v4349_v1 = vmul.f32 %v4282_v63, %v3070_v49  ;;  %v4234_v6 = vadd.f32 %v6690_v52, %v4233_v46  ;;  %v2148_v52 = vsel %vm7942_vm0, %v5203_v3, %v6038_v0  ;;  %v5270_v63 = vld [vmem:[%s6656_s26 + $0x88] sm:$0xff]  ;;  %vm7954_vm0 = vmmov %vm7953_vm10 }
 0x105   : > { %v4021_v53 = vmul.f32 %v3922_v12, %v2134_v35  ;;  %v2153_v16 = vsel %vm1245_vm3, %v2148_v52, %v6038_v0 }
 0x106   : > { %v4381_v7 = vadd.f32 %v4349_v1, %v4037_v50  ;;  %v4333_v10 = vmul.f32 %v4234_v6, %v2757_v59  ;;  %v4421_v50 = vpop.permute.xlu0 %4420  ;;  %v3660_v1 = vsel %vm7945_vm14, %v5357_v44, %v6038_v0  ;;  %v2809_v59 = vsel %vm7946_vm7, %v5270_v63, %v6038_v0 }
 0x107   : > { %v3665_v46 = vsel %vm3114_vm12, %v3660_v1, %v6038_v0  ;;  %v4581_v6 = vmul.f32 %v7526_v62, %v4421_v50  ;;  %v2814_v56 = vsel %vm1245_vm3, %v2809_v59, %v6038_v0  ;;  %vm7947_vm12 = vcmp.lt.s32.totalorder %v6742_v15, 500  ;;  %v5213_v59 = vld [vmem:[%s6647_s22 + $0xa0] sm:$0xff] }
 0x108   : > { %5457 = vmatmul.msk.f32.gmra.mxu3 %vm4077_vm5, %v4381_v7  ;;  %v4365_v51 = vadd.f32 %v4333_v10, %v4021_v53  ;;  %4565 = vperm.xlu2 %5949, %v3665_v46   ;;  %vm7948_vm4 = vmmov %vm7947_vm12  ;;  %v4583_v50 = vmul.f32 %v7526_v62, %v7514_v31 }
 0x109   : > { %v4284_v60 = vpop.f32.mrf.mxu3 }
 0x10a   : > { %v4285_v11 = vadd.f32 %v7484_v38, %v4284_v60  ;;  %5441 = vmatmul.msk.f32.gmra.mxu2 %vm4077_vm5, %v4365_v51  ;;  %v3924_v18 = vpop.f32.mrf.mxu0  ;;  %v5272_v60 = vld [vmem:[%s6656_s26 + $0x90] sm:$0xff] }
 0x10b   : > { %v3925_v20 = vadd.f32 %v7494_v2, %v3924_v18  ;;  %v4236_v21 = vpop.f32.mrf.mxu1 }
 0x10c   : > { %v4350_v54 = vmul.f32 %v4285_v11, %v3098_v43  ;;  %v4237_v23 = vadd.f32 %v7484_v38, %v4236_v21  ;;  %v4436_v10 = vpop.permute.xlu1 %4435  ;;  %v2205_v11 = vsel %vm7947_vm12, %v5209_v47, %v6038_v0 }
 0x10d   : > { %v4022_v27 = vmul.f32 %v3925_v20, %v2153_v16  ;;  %v2210_v21 = vsel %vm1245_vm3, %v2205_v11, %v6038_v0 }
 0x10e   : > { %v4382_v28 = vadd.f32 %v4350_v54, %v4038_v48  ;;  %v4334_v36 = vmul.f32 %v4237_v23, %v2776_v33  ;;  %v4426_v48 = vpop.permute.xlu0 %4425  ;;  %v2828_v54 = vsel %vm7948_vm4, %v5272_v60, %v6038_v0  ;;  %v4584_v60 = vmul.f32 %v7526_v62, %v4436_v10 }
 0x10f   : > { %v4582_v33 = vmul.f32 %v7526_v62, %v4426_v48  ;;  %v2833_v24 = vsel %vm1245_vm3, %v2828_v54, %v6038_v0  ;;  %v5215_v54 = vld [vmem:[%s6647_s22 + $0xa8] sm:$0xff] }
 0x110   : > { %5458 = vmatmul.msk.f32.gmra.mxu3 %vm4077_vm5, %v4382_v28  ;;  %v4366_v39 = vadd.f32 %v4334_v36, %v4022_v27  ;;  %v5211_v36 = vld [vmem:[%s6647_s22 + $0x98] sm:$0xff] }
 0x112   : > { %5442 = vmatmul.msk.f32.gmra.mxu2 %vm4077_vm5, %v4366_v39  ;;  %v3927_v42 = vpop.f32.mrf.mxu0 }
 0x113   : > { %v3928_v49 = vadd.f32 %v7494_v2, %v3927_v42  ;;  %v4239_v30 = vpop.f32.mrf.mxu1 }
 0x114   : > { %v4240_v26 = vadd.f32 %v7484_v38, %v4239_v30  ;;  %v7552_v7 = vpop.permute.xlu2 %4440 }
 0x115   : > { %v4023_v58 = vmul.f32 %v3928_v49, %v2172_v8  ;;  %v5274_v8 = vld [vmem:[%s6656_s26 + $0x98] sm:$0xff] }
 0x116   : > { %v4335_v35 = vmul.f32 %v4240_v26, %v2795_v57  ;;  %v2224_v57 = vsel %vm7949_vm2, %v5211_v36, %v6038_v0  ;;  %v2847_v19 = vsel %vm7950_vm13, %v5274_v8, %v6038_v0  ;;  %v4585_v8 = vmul.f32 %v7526_v62, %v7552_v7 }
 0x117   : > { %v2229_v63 = vsel %vm1245_vm3, %v2224_v57, %v6038_v0  ;;  %v2852_v45 = vsel %vm1245_vm3, %v2847_v19, %v6038_v0  ;;  %v5217_v19 = vld [vmem:[%s6647_s22 + $0xb0] sm:$0xff] }
 0x118   : > { %v4367_v12 = vadd.f32 %v4335_v35, %v4023_v58 }
 0x11a   : > { %5443 = vmatmul.msk.f32.gmra.mxu2 %vm4077_vm5, %v4367_v12  ;;  %v3930_v3 = vpop.f32.mrf.mxu0 }
 0x11b   : > { %v3931_v25 = vadd.f32 %v7494_v2, %v3930_v3  ;;  %v4242_v53 = vpop.f32.mrf.mxu1  ;;  %v5276_v3 = vld [vmem:[%s6656_s26 + $0xa0] sm:$0xff] }
 0x11c   : > { %v4243_v22 = vadd.f32 %v7484_v38, %v4242_v53  ;;  %v7583_v28 = vpop.permute.xlu2 %4445  ;;  %v7588_v37 = vpop.permute.xlu1 %4455  ;;  %v2243_v53 = vsel %vm7951_vm15, %v5213_v59, %v6038_v0 }
 0x11d   : > { %v4024_v52 = vmul.f32 %v3931_v25, %v2191_v17  ;;  %v4726_v43 = vpop.f32.mrf.mxu2 }
 0x11e   : > { %v4336_v51 = vmul.f32 %v4243_v22, %v2814_v56  ;;  %v4727_v61 = vadd.f32 %v4726_v43, %v4581_v6 }
 0x120   : > { %v4826_v16 = vadd.f32 %v7558_v5, %v4727_v61  ;;  %v4368_v18 = vadd.f32 %v4336_v51, %v4024_v52  ;;  %v2866_v52 = vsel %vm7952_vm6, %v5276_v3, %v6038_v0  ;;  %v2248_v51 = vsel %vm1245_vm3, %v2243_v53, %v6038_v0 }
 0x121   : > { %v2871_v11 = vsel %vm1245_vm3, %v2866_v52, %v6038_v0 }
 0x122   : > { %v4858_v20 = vmax.f32 %v4826_v16, 0.0  ;;  %5444 = vmatmul.msk.f32.gmra.mxu2 %vm4077_vm5, %v4368_v18  ;;  %v3933_v23 = vpop.f32.mrf.mxu0 }
 0x123   : > { %v3934_v15 = vadd.f32 %v7494_v2, %v3933_v23  ;;  %v4245_v27 = vpop.f32.mrf.mxu1  ;;  %v5278_v23 = vld [vmem:[%s6656_s26 + $0xa8] sm:$0xff] }
 0x124   : > { %4890 = vst [vmem:[%s7572_s29] sm:$0xff] %v4858_v20  ;;  %v4246_v29 = vadd.f32 %v7484_v38, %v4245_v27  ;;  %v7613_v46 = vpop.permute.xlu1 %4470  ;;  %v2262_v27 = vsel %vm7953_vm10, %v5215_v54, %v6038_v0 }
 0x125   : > { %v4025_v39 = vmul.f32 %v3934_v15, %v2210_v21  ;;  %v4729_v41 = vpop.f32.mrf.mxu2 }
 0x126   : > { %v4337_v42 = vmul.f32 %v4246_v29, %v2833_v24  ;;  %v4730_v49 = vadd.f32 %v4729_v41, %v4582_v33 }
 0x128   : > { %v4827_v30 = vadd.f32 %v7558_v5, %v4730_v49  ;;  %v4369_v26 = vadd.f32 %v4337_v42, %v4025_v39  ;;  %v7615_v31 = vpop.permute.xlu0 %4450  ;;  %v2885_v39 = vsel %vm7954_vm0, %v5278_v23, %v6038_v0  ;;  %v2267_v42 = vsel %vm1245_vm3, %v2262_v27, %v6038_v0 }
 0x12a   : > { %v4859_v58 = vmax.f32 %v4827_v30, 0.0  ;;  %5445 = vmatmul.msk.f32.gmra.mxu2 %vm4077_vm5, %v4369_v26  ;;  %v3936_v35 = vpop.f32.mrf.mxu0  ;;  %v7608_v1 = vpop.permute.xlu2 %4460  ;;  %v2890_v30 = vsel %vm1245_vm3, %v2885_v39, %v6038_v0 }
 0x12b   : > { %v3937_v44 = vadd.f32 %v7494_v2, %v3936_v35  ;;  %v4248_v34 = vpop.f32.mrf.mxu1  ;;  %v5280_v35 = vld [vmem:[%s6656_s26 + $0xb0] sm:$0xff] }
 0x12c   : > { %4891 = vst [vmem:[%s7572_s29 + $0x8] sm:$0xff] %v4859_v58  ;;  %v4249_v12 = vadd.f32 %v7484_v38, %v4248_v34 }
 0x12d   : > { %v4026_v6 = vmul.f32 %v3937_v44, %v2229_v63  ;;  %v4732_v17 = vpop.f32.mrf.mxu2  ;;  %v7639_v20 = vpop.permute.xlu1 %4485 }
 0x12e   : > { %v4338_v25 = vmul.f32 %v4249_v12, %v2852_v45  ;;  %v4733_v56 = vadd.f32 %v4732_v17, %v4583_v50  ;;  %v2281_v12 = vsel %vm1034_vm8, %v5217_v19, %v6038_v0  ;;  %v2904_v17 = vsel %vm1034_vm8, %v5280_v35, %v6038_v0 }
 0x12f   : > { %vm7955_vm8 = vcmp.lt.s32.totalorder %v6081_v14, 500 }
 0x130   : > { %v4828_v22 = vadd.f32 %v7558_v5, %v4733_v56  ;;  %v4370_v47 = vadd.f32 %v4338_v25, %v4026_v6  ;;  %v7641_v10 = vpop.permute.xlu0 %4465  ;;  %v4586_v25 = vmul.f32 %v7526_v62, %v7583_v28  ;;  %v2286_v56 = vsel %vm1245_vm3, %v2281_v12, %v6038_v0 }
 0x132   : > { %v4860_v43 = vmax.f32 %v4828_v22, 0.0  ;;  %5446 = vmatmul.msk.f32.gmra.mxu2 %vm4077_vm5, %v4370_v47  ;;  %v3939_v61 = vpop.f32.mrf.mxu0  ;;  %v7634_v4 = vpop.permute.xlu2 %4475  ;;  %v2909_v47 = vsel %vm1245_vm3, %v2904_v17, %v6038_v0 }
 0x133   : > { %v3940_v48 = vadd.f32 %v7494_v2, %v3939_v61  ;;  %v4251_v16 = vpop.f32.mrf.mxu1  ;;  %v5282_v61 = vld [vmem:[%s6656_s26 + $0xb8] sm:$0xff] }
 0x134   : > { %4892 = vst [vmem:[%s7572_s29 + $0x10] sm:$0xff] %v4860_v43  ;;  %v4252_v18 = vadd.f32 %v7484_v38, %v4251_v16  ;;  %v5219_v43 = vld [vmem:[%s6647_s22 + $0xb8] sm:$0xff] }
 0x135   : > { %v4027_v33 = vmul.f32 %v3940_v48, %v2248_v51  ;;  %v4735_v21 = vpop.f32.mrf.mxu2  ;;  %v7669_v34 = vpop.permute.xlu1 %4500 }
 0x136   : > { %v4339_v15 = vmul.f32 %v4252_v18, %v2871_v11  ;;  %v4736_v24 = vadd.f32 %v4735_v21, %v4584_v60  ;;  %v2300_v18 = vsel %vm1053_vm1, %v5219_v43, %v6038_v0  ;;  %v2923_v21 = vsel %vm1053_vm1, %v5282_v61, %v6038_v0  ;;  %vm7956_vm1 = vmmov %vm7955_vm8 }
 0x137   : > { %v2305_v27 = vsel %vm1245_vm3, %v2300_v18, %v6038_v0  ;;  %v2928_v55 = vsel %vm1245_vm3, %v2923_v21, %v6038_v0  ;;  %v4590_v61 = vmul.f32 %v7526_v62, %v7641_v10  ;;  %v4591_v10 = vmul.f32 %v7526_v62, %v7613_v46 }
 0x138   : > { %v4829_v29 = vadd.f32 %v7558_v5, %v4736_v24  ;;  %v4371_v36 = vadd.f32 %v4339_v15, %v4027_v33  ;;  %v7666_v50 = vpop.permute.xlu0 %4480  ;;  %v4587_v24 = vmul.f32 %v7526_v62, %v7615_v31  ;;  %v4592_v46 = vmul.f32 %v7526_v62, %v7634_v4 }
 0x139   : > { %v4593_v4 = vmul.f32 %v7526_v62, %v7666_v50  ;;  %v4594_v50 = vmul.f32 %v7526_v62, %v7639_v20 }
 0x13a   : > { %v4861_v41 = vmax.f32 %v4829_v29, 0.0  ;;  %5447 = vmatmul.msk.f32.gmra.mxu2 %vm4077_vm5, %v4371_v36  ;;  %v3942_v49 = vpop.f32.mrf.mxu0  ;;  %v7664_v58 = vpop.permute.xlu2 %4490 }
 0x13b   : > { %v3943_v57 = vadd.f32 %v7494_v2, %v3942_v49  ;;  %v4254_v13 = vpop.f32.mrf.mxu1  ;;  %v4595_v20 = vmul.f32 %v7526_v62, %v7664_v58 }
 0x13c   : > { %4893 = vst [vmem:[%s7572_s29 + $0x18] sm:$0xff] %v4861_v41  ;;  %v4255_v26 = vadd.f32 %v7484_v38, %v4254_v13 }
 0x13d   : > { %v4028_v7 = vmul.f32 %v3943_v57, %v2267_v42  ;;  %v4738_v63 = vpop.f32.mrf.mxu2  ;;  %v7703_v23 = vpop.permute.xlu1 %4515  ;;  %v5284_v57 = vld [vmem:[%s6656_s26 + $0xc0] sm:$0xff] }
 0x13e   : > { %v4340_v44 = vmul.f32 %v4255_v26, %v2890_v30  ;;  %v4739_v45 = vadd.f32 %v4738_v63, %v4585_v8  ;;  %v5221_v8 = vld [vmem:[%s6647_s22 + $0xc0] sm:$0xff]  ;;  %v2942_v63 = vsel %vm7956_vm1, %v5284_v57, %v6038_v0 }
 0x13f   : > { %v2319_v26 = vsel %vm7955_vm8, %v5221_v8, %v6038_v0  ;;  %v2947_v14 = vsel %vm1245_vm3, %v2942_v63, %v6038_v0 }
 0x140   : > { %v4830_v59 = vadd.f32 %v7558_v5, %v4739_v45  ;;  %v4372_v6 = vadd.f32 %v4340_v44, %v4028_v7  ;;  %v3952_v44 = vadd.f32 %v7494_v2, %v6736_v32  ;;  %v4588_v45 = vmul.f32 %v7526_v62, %v7588_v37 }
 0x142   : > { %v4862_v3 = vmax.f32 %v4830_v59, 0.0  ;;  %5448 = vmatmul.msk.f32.gmra.mxu2 %vm4077_vm5, %v4372_v6  ;;  %v3945_v53 = vpop.f32.mrf.mxu0  ;;  %v7691_v60 = vpop.permute.xlu0 %4495  ;;  %v2324_v6 = vsel %vm1245_vm3, %v2319_v26, %v6038_v0 }
 0x143   : > { %v3946_v22 = vadd.f32 %v7494_v2, %v3945_v53  ;;  %v4257_v40 = vpop.f32.mrf.mxu1  ;;  %v7694_v16 = vpop.permute.xlu2 %4505  ;;  %v4031_v37 = vmul.f32 %v3952_v44, %v2324_v6 }
 0x144   : > { %4894 = vst [vmem:[%s7572_s29 + $0x20] sm:$0xff] %v4862_v3  ;;  %v4258_v52 = vadd.f32 %v7484_v38, %v4257_v40 }
 0x145   : > { %v4029_v51 = vmul.f32 %v3946_v22, %v2286_v56  ;;  %v4741_v28 = vpop.f32.mrf.mxu2 }
 0x146   : > { %v4341_v48 = vmul.f32 %v4258_v52, %v2909_v47  ;;  %v4742_v11 = vadd.f32 %v4741_v28, %v4586_v25  ;;  %v7735_v59 = vpop.permute.xlu1 %4530  ;;  %v4589_v47 = vmul.f32 %v7526_v62, %v7608_v1 }
 0x148   : > { %v4831_v54 = vadd.f32 %v7558_v5, %v4742_v11  ;;  %v4373_v33 = vadd.f32 %v4341_v48, %v4029_v51 }
 0x14a   : > { %v4863_v15 = vmax.f32 %v4831_v54, 0.0  ;;  %5449 = vmatmul.msk.f32.gmra.mxu2 %vm4077_vm5, %v4373_v33  ;;  %v3948_v29 = vpop.f32.mrf.mxu0  ;;  %v7719_v13 = vpop.permute.xlu0 %4510 }
 0x14b   : > { %v3949_v36 = vadd.f32 %v7494_v2, %v3948_v29  ;;  %v4260_v39 = vpop.f32.mrf.mxu1  ;;  %v7728_v35 = vpop.permute.xlu2 %4520 }
 0x14c   : > { %4895 = vst [vmem:[%s7572_s29 + $0x28] sm:$0xff] %v4863_v15  ;;  %v4261_v41 = vadd.f32 %v7484_v38, %v4260_v39 }
 0x14d   : > { %v4030_v42 = vmul.f32 %v3949_v36, %v2305_v27  ;;  %v4744_v49 = vpop.f32.mrf.mxu2 }
 0x14e   : > { %v4342_v31 = vmul.f32 %v4261_v41, %v2928_v55  ;;  %v4745_v30 = vadd.f32 %v4744_v49, %v4587_v24 }
 0x150   : > { %v4832_v19 = vadd.f32 %v7558_v5, %v4745_v30  ;;  %v4374_v7 = vadd.f32 %v4342_v31, %v4030_v42 }
 0x152   : > { %v4864_v12 = vmax.f32 %v4832_v19, 0.0  ;;  %5450 = vmatmul.msk.f32.gmra.mxu2 %vm4077_vm5, %v4374_v7 }
 0x153   : > { %v4263_v17 = vpop.f32.mrf.mxu1  ;;  %v7746_v22 = vpop.permute.xlu0 %4525 }
 0x154   : > { %4896 = vst [vmem:[%s7572_s29 + $0x30] sm:$0xff] %v4864_v12  ;;  %v4264_v32 = vadd.f32 %v7484_v38, %v4263_v17  ;;  %v7751_v40 = vpop.permute.xlu2 %4535  ;;  %v4546_v38 = vpop.permute.xlu1 %4545 }
 0x155   : > { %v4747_v2 = vpop.f32.mrf.mxu2  ;;  %v4606_v51 = vmul.f32 %v7526_v62, %v4546_v38 }
 0x156   : > { %v4343_v3 = vmul.f32 %v4264_v32, %v2947_v14  ;;  %v4748_v25 = vadd.f32 %v4747_v2, %v4588_v45 }
 0x158   : > { %v4375_v56 = vadd.f32 %v4343_v3, %v4031_v37  ;;  %v4833_v53 = vadd.f32 %v7558_v5, %v4748_v25 }
 0x15a   : > { %v4865_v9 = vmax.f32 %v4833_v53, 0.0  ;;  %5451 = vmatmul.msk.f32.gmra.mxu2 %vm4077_vm5, %v4375_v56 }
 0x15b   : > { %v7758_v1 = vpop.permute.xlu0 %4540 }
 0x15c   : > { %4897 = vst [vmem:[%s7572_s29 + $0x38] sm:$0xff] %v4865_v9  ;;  %v4551_v54 = vpop.permute.xlu2 %4550  ;;  %v4561_v12 = vpop.permute.xlu1 %4560 }
 0x15d   : > { %v4750_v52 = vpop.f32.mrf.mxu2  ;;  %v4607_v27 = vmul.f32 %v7526_v62, %v4551_v54  ;;  %v4609_v6 = vmul.f32 %v7526_v62, %v4561_v12  ;;  %v4598_v12 = vmul.f32 %v7526_v62, %v7694_v16  ;;  %v4600_v16 = vmul.f32 %v7526_v62, %v7703_v23 }
 0x15e   : > { %v4751_v43 = vadd.f32 %v4750_v52, %v4589_v47  ;;  %v4602_v23 = vmul.f32 %v7526_v62, %v7746_v22  ;;  %v4604_v22 = vmul.f32 %v7526_v62, %v7751_v40 }
 0x160   : > { %v4834_v28 = vadd.f32 %v7558_v5, %v4751_v43 }
 0x162   : > { %v4866_v48 = vmax.f32 %v4834_v28, 0.0 }
 0x163   : > { %v4801_v11 = vpop.f32.mrf.mxu3  ;;  %v4556_v41 = vpop.permute.xlu0 %4555 }
 0x164   : > { %v4802_v18 = vadd.f32 %v4801_v11, %v4606_v51  ;;  %4898 = vst [vmem:[%s7572_s29 + $0x40] sm:$0xff] %v4866_v48  ;;  %v4608_v31 = vmul.f32 %v7526_v62, %v4556_v41  ;;  %v4566_v3 = vpop.permute.xlu2 %4565 }
 0x165   : > { %v4753_v33 = vpop.f32.mrf.mxu2  ;;  %v4610_v9 = vmul.f32 %v7526_v62, %v4566_v3 }
 0x166   : > { %v4851_v21 = vadd.f32 %v7558_v5, %v4802_v18  ;;  %v4754_v15 = vadd.f32 %v4753_v33, %v4590_v61 }
 0x168   : > { %v4883_v24 = vmax.f32 %v4851_v21, 0.0  ;;  %v4835_v29 = vadd.f32 %v7558_v5, %v4754_v15 }
 0x16a   : > { %4915 = vst [vmem:[%s7572_s29 + $0xc8] sm:$0xff] %v4883_v24  ;;  %v4867_v36 = vmax.f32 %v4835_v29, 0.0 }
 0x16b   : > { %v4804_v55 = vpop.f32.mrf.mxu3  ;;  %v4571_v28 = vpop.permute.xlu0 %4570 }
 0x16c   : > { %v4805_v39 = vadd.f32 %v4804_v55, %v4607_v27  ;;  %4899 = vst [vmem:[%s7572_s29 + $0x48] sm:$0xff] %v4867_v36  ;;  %v4611_v18 = vmul.f32 %v7526_v62, %v4571_v28 }
 0x16d   : > { %v4756_v8 = vpop.f32.mrf.mxu2 }
 0x16e   : > { %v4852_v42 = vadd.f32 %v7558_v5, %v4805_v39  ;;  %v4757_v49 = vadd.f32 %v4756_v8, %v4591_v10  ;;  %v4576_v10 = vpop.permute.xlu1 %4575 }
 0x16f   : > { %v4612_v41 = vmul.f32 %v7526_v62, %v4576_v10 }
 0x170   : > { %v4884_v57 = vmax.f32 %v4852_v42, 0.0  ;;  %v4836_v30 = vadd.f32 %v7558_v5, %v4757_v49  ;;  %v4596_v49 = vmul.f32 %v7526_v62, %v7691_v60 }
 0x172   : > { %4916 = vst [vmem:[%s7572_s29 + $0xd0] sm:$0xff] %v4884_v57  ;;  %v4868_v26 = vmax.f32 %v4836_v30, 0.0 }
 0x173   : > { %v4807_v19 = vpop.f32.mrf.mxu3 }
 0x174   : > { %v4808_v7 = vadd.f32 %v4807_v19, %v4608_v31  ;;  %4900 = vst [vmem:[%s7572_s29 + $0x50] sm:$0xff] %v4868_v26 }
 0x175   : > { %v4759_v63 = vpop.f32.mrf.mxu2 }
 0x176   : > { %v4853_v44 = vadd.f32 %v7558_v5, %v4808_v7  ;;  %v4760_v45 = vadd.f32 %v4759_v63, %v4592_v46  ;;  %v4597_v7 = vmul.f32 %v7526_v62, %v7669_v34  ;;  %v4599_v34 = vmul.f32 %v7526_v62, %v7719_v13 }
 0x177   : > { %v4601_v13 = vmul.f32 %v7526_v62, %v7728_v35  ;;  %v4603_v35 = vmul.f32 %v7526_v62, %v7735_v59 }
 0x178   : > { %v4885_v14 = vmax.f32 %v4853_v44, 0.0  ;;  %v4837_v17 = vadd.f32 %v7558_v5, %v4760_v45 }
 0x17a   : > { %4917 = vst [vmem:[%s7572_s29 + $0xd8] sm:$0xff] %v4885_v14  ;;  %v4869_v32 = vmax.f32 %v4837_v17, 0.0 }
 0x17b   : > { %v4810_v2 = vpop.f32.mrf.mxu3 }
 0x17c   : > { %v4811_v37 = vadd.f32 %v4810_v2, %v4609_v6  ;;  %4901 = vst [vmem:[%s7572_s29 + $0x58] sm:$0xff] %v4869_v32 }
 0x17d   : > { %v4762_v25 = vpop.f32.mrf.mxu2 }
 0x17e   : > { %v4854_v56 = vadd.f32 %v7558_v5, %v4811_v37  ;;  %v4763_v53 = vadd.f32 %v4762_v25, %v4593_v4 }
 0x180   : > { %v4886_v47 = vmax.f32 %v4854_v56, 0.0  ;;  %v4838_v38 = vadd.f32 %v7558_v5, %v4763_v53 }
 0x182   : > { %4918 = vst [vmem:[%s7572_s29 + $0xe0] sm:$0xff] %v4886_v47  ;;  %v4870_v52 = vmax.f32 %v4838_v38, 0.0 }
 0x183   : > { %v4813_v43 = vpop.f32.mrf.mxu3 }
 0x184   : > { %v4814_v51 = vadd.f32 %v4813_v43, %v4610_v9  ;;  %4902 = vst [vmem:[%s7572_s29 + $0x60] sm:$0xff] %v4870_v52 }
 0x185   : > { %v4765_v61 = vpop.f32.mrf.mxu2 }
 0x186   : > { %v4855_v48 = vadd.f32 %v7558_v5, %v4814_v51  ;;  %v4766_v11 = vadd.f32 %v4765_v61, %v4594_v50 }
 0x188   : > { %v4887_v54 = vmax.f32 %v4855_v48, 0.0  ;;  %v4839_v33 = vadd.f32 %v7558_v5, %v4766_v11 }
 0x18a   : > { %4919 = vst [vmem:[%s7572_s29 + $0xe8] sm:$0xff] %v4887_v54  ;;  %v4871_v21 = vmax.f32 %v4839_v33, 0.0 }
 0x18b   : > { %v4816_v15 = vpop.f32.mrf.mxu3 }
 0x18c   : > { %v4817_v24 = vadd.f32 %v4816_v15, %v4611_v18  ;;  %4903 = vst [vmem:[%s7572_s29 + $0x68] sm:$0xff] %v4871_v21 }
 0x18d   : > { %v4768_v29 = vpop.f32.mrf.mxu2 }
 0x18e   : > { %v4856_v27 = vadd.f32 %v7558_v5, %v4817_v24  ;;  %v4769_v36 = vadd.f32 %v4768_v29, %v4595_v20  ;;  %v4605_v24 = vmul.f32 %v7526_v62, %v7758_v1 }
 0x190   : > { %v4888_v55 = vmax.f32 %v4856_v27, 0.0  ;;  %v4840_v39 = vadd.f32 %v7558_v5, %v4769_v36 }
 0x192   : > { %4920 = vst [vmem:[%s7572_s29 + $0xf0] sm:$0xff] %v4888_v55  ;;  %v4872_v8 = vmax.f32 %v4840_v39, 0.0 }
 0x193   : > { %v4819_v58 = vpop.f32.mrf.mxu3 }
 0x194   : > { %v4820_v42 = vadd.f32 %v4819_v58, %v4612_v41  ;;  %4904 = vst [vmem:[%s7572_s29 + $0x70] sm:$0xff] %v4872_v8 }
 0x195   : > { %v4771_v31 = vpop.f32.mrf.mxu2 }
 0x196   : > { %v4857_v57 = vadd.f32 %v7558_v5, %v4820_v42  ;;  %v4772_v30 = vadd.f32 %v4771_v31, %v4596_v49 }
 0x198   : > { %v4889_v46 = vmax.f32 %v4857_v57, 0.0  ;;  %v4841_v26 = vadd.f32 %v7558_v5, %v4772_v30 }
 0x19a   : > { %4921 = vst [vmem:[%s7572_s29 + $0xf8] sm:$0xff] %v4889_v46  ;;  %v4873_v19 = vmax.f32 %v4841_v26, 0.0 }
 0x19c   : > { %4905 = vst [vmem:[%s7572_s29 + $0x78] sm:$0xff] %v4873_v19 }
 0x19d   : > { %v4774_v63 = vpop.f32.mrf.mxu2 }
 0x19e   : > { %v4775_v44 = vadd.f32 %v4774_v63, %v4597_v7 }
 0x1a0   : > { %v4842_v60 = vadd.f32 %v7558_v5, %v4775_v44 }
 0x1a2   : > { %v4874_v45 = vmax.f32 %v4842_v60, 0.0 }
 0x1a4   : > { %4906 = vst [vmem:[%s7572_s29 + $0x80] sm:$0xff] %v4874_v45 }
 0x1a5   : > { %v4777_v6 = vpop.f32.mrf.mxu2 }
 0x1a6   : > { %v4778_v14 = vadd.f32 %v4777_v6, %v4598_v12 }
 0x1a8   : > { %v4843_v17 = vadd.f32 %v7558_v5, %v4778_v14 }
 0x1aa   : > { %v4875_v4 = vmax.f32 %v4843_v17, 0.0 }
 0x1ac   : > { %4907 = vst [vmem:[%s7572_s29 + $0x88] sm:$0xff] %v4875_v4 }
 0x1ad   : > { %v4780_v32 = vpop.f32.mrf.mxu2 }
 0x1ae   : > { %v4781_v2 = vadd.f32 %v4780_v32, %v4599_v34 }
 0x1b0   : > { %v4844_v37 = vadd.f32 %v7558_v5, %v4781_v2 }
 0x1b2   : > { %v4876_v3 = vmax.f32 %v4844_v37, 0.0 }
 0x1b4   : > { %4908 = vst [vmem:[%s7572_s29 + $0x90] sm:$0xff] %v4876_v3 }
 0x1b5   : > { %v4783_v25 = vpop.f32.mrf.mxu2 }
 0x1b6   : > { %v4784_v56 = vadd.f32 %v4783_v25, %v4600_v16 }
 0x1b8   : > { %v4845_v53 = vadd.f32 %v7558_v5, %v4784_v56 }
 0x1ba   : > { %v4877_v47 = vmax.f32 %v4845_v53, 0.0 }
 0x1bc   : > { %4909 = vst [vmem:[%s7572_s29 + $0x98] sm:$0xff] %v4877_v47 }
 0x1bd   : > { %v4786_v9 = vpop.f32.mrf.mxu2 }
 0x1be   : > { %v4787_v38 = vadd.f32 %v4786_v9, %v4601_v13 }
 0x1c0   : > { %v4846_v50 = vadd.f32 %v7558_v5, %v4787_v38 }
 0x1c2   : > { %v4878_v52 = vmax.f32 %v4846_v50, 0.0 }
 0x1c4   : > { %4910 = vst [vmem:[%s7572_s29 + $0xa0] sm:$0xff] %v4878_v52 }
 0x1c5   : > { %v4789_v43 = vpop.f32.mrf.mxu2 }
 0x1c6   : > { %v4790_v51 = vadd.f32 %v4789_v43, %v4602_v23 }
 0x1c8   : > { %v4847_v28 = vadd.f32 %v7558_v5, %v4790_v51 }
 0x1ca   : > { %v4879_v61 = vmax.f32 %v4847_v28, 0.0 }
 0x1cc   : > { %4911 = vst [vmem:[%s7572_s29 + $0xa8] sm:$0xff] %v4879_v61 }
 0x1cd   : > { %v4792_v48 = vpop.f32.mrf.mxu2 }
 0x1ce   : > { %v4793_v11 = vadd.f32 %v4792_v48, %v4603_v35 }
 0x1d0   : > { %v4848_v18 = vadd.f32 %v7558_v5, %v4793_v11 }
 0x1d2   : > { %v4880_v54 = vmax.f32 %v4848_v18, 0.0 }
 0x1d4   : > { %4912 = vst [vmem:[%s7572_s29 + $0xb0] sm:$0xff] %v4880_v54 }
 0x1d5   : > { %v4795_v33 = vpop.f32.mrf.mxu2 }
 0x1d6   : > { %v4796_v20 = vadd.f32 %v4795_v33, %v4604_v22 }
 0x1d8   : > { %v4849_v21 = vadd.f32 %v7558_v5, %v4796_v20 }
 0x1da   : > { %v4881_v15 = vmax.f32 %v4849_v21, 0.0 }
 0x1dc   : > { %4913 = vst [vmem:[%s7572_s29 + $0xb8] sm:$0xff] %v4881_v15 }
 0x1dd   : > { %v4798_v59 = vpop.f32.mrf.mxu2 }
 0x1de   : > { %v4799_v27 = vadd.f32 %v4798_v59, %v4605_v24 }
 0x1e0   : > { %v4850_v29 = vadd.f32 %v7558_v5, %v4799_v27 }
 0x1e2   : > { %v4882_v10 = vmax.f32 %v4850_v29, 0.0 }
 0x1e4   : > { %4914 = vst [vmem:[%s7572_s29 + $0xc0] sm:$0xff] %v4882_v10 }
 0x1e5 PF: > { %s28_s27 = sadd.s32 1, %s5962_s27  }
 0x1e6   : > { %p25_p7 = scmp.ge.s32.totalorder %s28_s27, 4  }
 0x1e8   :  { %27 = sbr.rel (!%p25_p7) target bundleno = 2 (0x2), region = 420 }

</bundles_post_ra>
